<compile_context>
chip_gen: v7x
topology: tpu7x:2x2x1
jax: 0.10.0
libtpu: 0.0.40
codegen_flags: <defaults>
</compile_context>

<pallas_src>
import functools

import jax
import jax.numpy as jnp
from jax.experimental import pallas as pl
from jax.experimental.pallas import tpu as pltpu


# ---------------------------------------------------------------------------
# Fused kernel: conv_real (as matmul) -> ReLU -> fc1 -> act -> merged
# alpha|beta head -> softplus + 1.  One batch tile per grid step.
# ---------------------------------------------------------------------------
def _fused_actor_kernel(x_ref, wc_ref, bc_ref, w1_ref, b1_ref, wh_ref, bh_ref,
                        o_ref, *, act):
    # conv_real(3x3, stride 1, pad 1) expressed exactly as a (256, 1024) matmul
    # on the NCHW-flattened input; f32 accumulation on the MXU.
    h = jnp.dot(x_ref[...], wc_ref[...],
                preferred_element_type=jnp.float32) + bc_ref[...]
    h = jnp.maximum(h, 0.0)                                   # (TB, 1024) f32
    # fc1 + activation (epilogue stays f32: v5e has no bf16 VPU/EUP path).
    z = jnp.dot(h.astype(jnp.bfloat16), w1_ref[...],
                preferred_element_type=jnp.float32) + b1_ref[...]
    z = jnp.tanh(z) if act == "tanh" else jnp.maximum(z, 0.0)
    # merged alpha|beta head (zero-padded to 128 lanes -> unmasked stores).
    y = jnp.dot(z.astype(jnp.bfloat16), wh_ref[...],
                preferred_element_type=jnp.float32) + bh_ref[...]
    # numerically stable softplus, then +1  (== F.softplus(y) + 1.0)
    o_ref[...] = jnp.maximum(y, 0.0) + jnp.log1p(jnp.exp(-jnp.abs(y))) + 1.0


def fused_actor_forward(x_bf16, p, *, act, block_b=256):
    """x_bf16: (B, 256) bf16 NCHW-flattened state.  Returns (B, 128) f32."""
    B, in_dim = x_bf16.shape
    hidden = p["fc1_w"].shape[1]
    n_out = p["head_w"].shape[1]

    if B <= block_b:                      # tiny / rollout batches: one grid step
        tb, pad = B, 0
    else:                                 # training batches: tiled + resident weights
        tb = block_b
        pad = -B % tb
        if pad:
            x_bf16 = jnp.pad(x_bf16, ((0, pad), (0, 0)))
    bp = B + pad
    grid = (bp // tb,)

    flops = 2 * bp * (in_dim * 1024 + 1024 * hidden + hidden * n_out)
    transcendentals = bp * n_out + (bp * hidden if act == "tanh" else 0)
    bytes_accessed = int(
        x_bf16.size * x_bf16.dtype.itemsize
        + sum(p[k].size * p[k].dtype.itemsize
              for k in ("conv_mat", "conv_b", "fc1_w", "fc1_b", "head_w", "head_b"))
        + bp * n_out * 4)

    out = pl.pallas_call(
        functools.partial(_fused_actor_kernel, act=act),
        out_shape=jax.ShapeDtypeStruct((bp, n_out), jnp.float32),
        grid=grid,
        in_specs=[
            pl.BlockSpec((tb, in_dim), lambda i: (i, 0)),     # x: batch-tiled
            pl.BlockSpec((in_dim, 1024), lambda i: (0, 0)),   # conv matrix (resident)
            pl.BlockSpec((1, 1024), lambda i: (0, 0)),        # conv bias
            pl.BlockSpec((1024, hidden), lambda i: (0, 0)),   # fc1 weight (resident)
            pl.BlockSpec((1, hidden), lambda i: (0, 0)),      # fc1 bias
            pl.BlockSpec((hidden, n_out), lambda i: (0, 0)),  # merged head (resident)
            pl.BlockSpec((1, n_out), lambda i: (0, 0)),       # merged head bias
        ],
        out_specs=pl.BlockSpec((tb, n_out), lambda i: (i, 0)),
        compiler_params=pltpu.CompilerParams(
            dimension_semantics=("parallel",)),   # v7x: batch tiles across 2 TCs
        cost_estimate=pl.CostEstimate(
            flops=flops, transcendentals=transcendentals,
            bytes_accessed=bytes_accessed),
    )(x_bf16, p["conv_mat"], p["conv_b"], p["fc1_w"], p["fc1_b"],
      p["head_w"], p["head_b"])
    return out[:B] if pad else out


# ---------------------------------------------------------------------------
# Actor_Gaussian forward
# ---------------------------------------------------------------------------
def actor_gaussian_forward(params, s, action_dim, use_tanh=0, block_b=256):
    act = "tanh" if use_tanh else "relu"
    B = s.shape[0]
    # NCHW flatten of the conv input; cast to bf16 in the wrapper so the kernel's
    # input DMA carries half the bytes (review item 1).
    x = s.reshape(B, -1).astype(jnp.bfloat16)                 # (B, 4*8*8) = (B, 256)
    out = fused_actor_forward(x, params, act=act, block_b=block_b)  # (B, 128) f32
    alpha = out[:, :action_dim]
    beta = out[:, action_dim:2 * action_dim]
    return alpha, beta


# ---------------------------------------------------------------------------
# Parameter construction
# ---------------------------------------------------------------------------
def _conv3x3_p1_as_matmul(w, h=8, w_sp=8):
    """Expand Conv2d(I->O, k=3, stride=1, pad=1) weights (O, I, 3, 3) into a dense
    (I*h*w, O*h*w) matrix M such that, for NCHW torch.flatten ordering,
    flatten(conv(x)) == flatten(x) @ M  exactly."""
    o_ch, i_ch, kh, kw = w.shape
    hw = h * w_sp
    oy, ox = jnp.meshgrid(jnp.arange(h), jnp.arange(w_sp), indexing="ij")
    out_sp = (oy * w_sp + ox).reshape(-1)
    m = jnp.zeros((i_ch * hw, o_ch * hw), jnp.float32)
    for ky in range(kh):
        for kx in range(kw):
            iy = oy + ky - 1
            ix = ox + kx - 1
            valid = ((iy >= 0) & (iy < h) & (ix >= 0) & (ix < w_sp)).reshape(-1)
            in_sp = (jnp.clip(iy, 0, h - 1) * w_sp
                     + jnp.clip(ix, 0, w_sp - 1)).reshape(-1)
            s_mat = jnp.zeros((hw, hw), jnp.float32).at[in_sp, out_sp].add(
                valid.astype(jnp.float32))
            m = m + jnp.einsum("oi,pq->ipoq", w[:, :, ky, kx], s_mat).reshape(
                i_ch * hw, o_ch * hw)
    return m


def init_params(key, action_dim, hidden_width=512):
    ks = jax.random.split(key, 4)

    def w(k, shape, scale):
        return scale * jax.random.normal(k, shape, dtype=jnp.float32)

    # TODO(synk): exact nn.init.orthogonal_ is not reproduced; shapes & zero bias are.
    # fc2 / conv_imag / conv_matrix exist in the module but are unused in forward.
    return {
        "conv_w": w(ks[0], (16, 4, 3, 3), 0.1),
        "conv_b": jnp.zeros((16,), jnp.float32),
        "fc1_w": w(ks[1], (1024, hidden_width), 0.03),
        "fc1_b": jnp.zeros((hidden_width,), jnp.float32),
        "alpha_w": w(ks[2], (hidden_width, action_dim), 0.01),
        "alpha_b": jnp.zeros((action_dim,), jnp.float32),
        "beta_w": w(ks[3], (hidden_width, action_dim), 0.01),
        "beta_b": jnp.zeros((action_dim,), jnp.float32),
    }


def prepare_params(raw, h=8, w_sp=8):
    """Pack raw (torch-shaped) parameters into the fused-kernel layout."""
    conv_mat = _conv3x3_p1_as_matmul(raw["conv_w"], h, w_sp)      # (256, 1024)
    conv_b = jnp.repeat(raw["conv_b"], h * w_sp)                  # (1024,) NCHW flatten

    head_w = jnp.concatenate([raw["alpha_w"], raw["beta_w"]], axis=1)   # (H, 2A)
    head_b = jnp.concatenate([raw["alpha_b"], raw["beta_b"]])
    two_a = head_w.shape[1]
    n_pad = ((two_a + 127) // 128) * 128                          # lane-dense output
    head_w = jnp.pad(head_w, ((0, 0), (0, n_pad - two_a)))
    head_b = jnp.pad(head_b, (0, n_pad - two_a))

    return {
        "conv_mat": conv_mat.astype(jnp.bfloat16),
        "conv_b": conv_b.reshape(1, -1).astype(jnp.float32),
        "fc1_w": raw["fc1_w"].astype(jnp.bfloat16),
        "fc1_b": raw["fc1_b"].reshape(1, -1).astype(jnp.float32),
        "head_w": head_w.astype(jnp.bfloat16),
        "head_b": head_b.reshape(1, -1).astype(jnp.float32),
    }


# ---------------------------------------------------------------------------
# Pure-JAX reference (real lax.conv, same bf16 casts) for correctness checking.
# ---------------------------------------------------------------------------
def reference_forward(raw, s, action_dim, use_tanh=0):
    x = s.astype(jnp.bfloat16)
    conv_w = raw["conv_w"].astype(jnp.bfloat16)
    hm = jax.lax.conv_general_dilated(
        x, conv_w, window_strides=(1, 1), padding=((1, 1), (1, 1)),
        dimension_numbers=("NCHW", "OIHW", "NCHW"),
        preferred_element_type=jnp.float32)
    hm = jnp.maximum(hm + raw["conv_b"].reshape(1, -1, 1, 1), 0.0)
    hf = hm.reshape(hm.shape[0], -1)                               # torch.flatten(., 1)
    z = jnp.dot(hf.astype(jnp.bfloat16), raw["fc1_w"].astype(jnp.bfloat16),
                preferred_element_type=jnp.float32) + raw["fc1_b"]
    z = jnp.tanh(z) if use_tanh else jnp.maximum(z, 0.0)
    zb = z.astype(jnp.bfloat16)
    a = jnp.dot(zb, raw["alpha_w"].astype(jnp.bfloat16),
                preferred_element_type=jnp.float32) + raw["alpha_b"]
    b = jnp.dot(zb, raw["beta_w"].astype(jnp.bfloat16),
                preferred_element_type=jnp.float32) + raw["beta_b"]
    return jax.nn.softplus(a) + 1.0, jax.nn.softplus(b) + 1.0


if __name__ == "__main__":
    key = jax.random.PRNGKey(0)
    k_param, k_input = jax.random.split(key)

    action_dim = 4
    hidden_width = 512
    raw = init_params(k_param, action_dim, hidden_width)
    params = prepare_params(raw)

    # NCHW input: (batch=2, channels=4, H=8, W=8) -> 16*8*8 = 1024 = fc1 in_features
    x = jax.random.normal(k_input, (2, 4, 8, 8), dtype=jnp.float32)

    fwd = jax.jit(functools.partial(actor_gaussian_forward,
                                    action_dim=action_dim, use_tanh=0))
    alpha, beta = fwd(params, x)
    alpha = jax.block_until_ready(alpha)
    beta = jax.block_until_ready(beta)

    ref_alpha, ref_beta = reference_forward(raw, x, action_dim, use_tanh=0)

    assert alpha.shape == (2, action_dim) and beta.shape == (2, action_dim)
    # Beta-distribution parameters from softplus(.) + 1 must be > 1 and finite
    assert bool(jnp.all(alpha > 1.0)) and bool(jnp.all(beta > 1.0))
    assert bool(jnp.all(jnp.isfinite(alpha))) and bool(jnp.all(jnp.isfinite(beta)))
    assert bool(jnp.allclose(alpha, ref_alpha, rtol=2e-2, atol=2e-2))
    assert bool(jnp.allclose(beta, ref_beta, rtol=2e-2, atol=2e-2))

    print("KERNEL_OK")
</pallas_src>

<mosaic_0001>
module attributes {stable_mosaic.version = 11 : i64} {
  func.func @_fused_actor_kernel(%arg0: i32, %arg1: memref<2x256xbf16, #tpu.memory_space<vmem>>, %arg2: memref<256x1024xbf16, #tpu.memory_space<vmem>>, %arg3: memref<1x1024xf32, #tpu.memory_space<vmem>>, %arg4: memref<1024x512xbf16, #tpu.memory_space<vmem>>, %arg5: memref<1x512xf32, #tpu.memory_space<vmem>>, %arg6: memref<512x128xbf16, #tpu.memory_space<vmem>>, %arg7: memref<1x128xf32, #tpu.memory_space<vmem>>, %arg8: memref<2x128xf32, #tpu.memory_space<vmem>>) attributes {dimension_semantics = [#tpu.dimension_semantics<parallel>], iteration_bounds = array<i64: 1>, scalar_prefetch = 0 : i64, scratch_operands = 0 : i64, tpu.core_type = #tpu.core_type<tc>, window_params = [{transform_indices = @transform_0, window_bounds = array<i64: 2, 256>}, {pipeline_mode = #tpu.pipeline_mode<synchronous>, transform_indices = @transform_1, window_bounds = array<i64: 256, 1024>}, {pipeline_mode = #tpu.pipeline_mode<synchronous>, transform_indices = @transform_2, window_bounds = array<i64: 1, 1024>}, {pipeline_mode = #tpu.pipeline_mode<synchronous>, transform_indices = @transform_3, window_bounds = array<i64: 1024, 512>}, {pipeline_mode = #tpu.pipeline_mode<synchronous>, transform_indices = @transform_4, window_bounds = array<i64: 1, 512>}, {pipeline_mode = #tpu.pipeline_mode<synchronous>, transform_indices = @transform_5, window_bounds = array<i64: 512, 128>}, {pipeline_mode = #tpu.pipeline_mode<synchronous>, transform_indices = @transform_6, window_bounds = array<i64: 1, 128>}, {transform_indices = @transform_7, window_bounds = array<i64: 2, 128>}]} {
    %c0 = arith.constant 0 : index
    %c0_0 = arith.constant 0 : index
    %0 = vector.load %arg1[%c0, %c0_0] : memref<2x256xbf16, #tpu.memory_space<vmem>>, vector<2x256xbf16>
    %c0_1 = arith.constant 0 : index
    %c0_2 = arith.constant 0 : index
    %1 = vector.load %arg2[%c0_1, %c0_2] : memref<256x1024xbf16, #tpu.memory_space<vmem>>, vector<256x1024xbf16>
    %cst = arith.constant dense<0.000000e+00> : vector<2x1024xf32>
    %2 = tpu.matmul %0, %1, %cst {dimension_numbers = #tpu.dot_dimension_numbers<[1], [0], [0], [1], [0, 0, 1, 1], [], []>} : vector<2x256xbf16>, vector<256x1024xbf16>, vector<2x1024xf32> -> vector<2x1024xf32>
    %c0_3 = arith.constant 0 : index
    %c0_4 = arith.constant 0 : index
    %3 = vector.load %arg3[%c0_3, %c0_4] : memref<1x1024xf32, #tpu.memory_space<vmem>>, vector<1x1024xf32>
    %4 = vector.broadcast %3 : vector<1x1024xf32> to vector<2x1024xf32>
    %5 = arith.addf %2, %4 : vector<2x1024xf32>
    %cst_5 = arith.constant 0.000000e+00 : f32
    %6 = vector.broadcast %cst_5 : f32 to vector<2x1024xf32>
    %7 = arith.maximumf %5, %6 : vector<2x1024xf32>
    %8 = arith.truncf %7 : vector<2x1024xf32> to vector<2x1024xbf16>
    %c0_6 = arith.constant 0 : index
    %c0_7 = arith.constant 0 : index
    %9 = vector.load %arg4[%c0_6, %c0_7] : memref<1024x512xbf16, #tpu.memory_space<vmem>>, vector<1024x512xbf16>
    %cst_8 = arith.constant dense<0.000000e+00> : vector<2x512xf32>
    %10 = tpu.matmul %8, %9, %cst_8 {dimension_numbers = #tpu.dot_dimension_numbers<[1], [0], [0], [1], [0, 0, 1, 1], [], []>} : vector<2x1024xbf16>, vector<1024x512xbf16>, vector<2x512xf32> -> vector<2x512xf32>
    %c0_9 = arith.constant 0 : index
    %c0_10 = arith.constant 0 : index
    %11 = vector.load %arg5[%c0_9, %c0_10] : memref<1x512xf32, #tpu.memory_space<vmem>>, vector<1x512xf32>
    %12 = vector.broadcast %11 : vector<1x512xf32> to vector<2x512xf32>
    %13 = arith.addf %10, %12 : vector<2x512xf32>
    %cst_11 = arith.constant 0.000000e+00 : f32
    %14 = vector.broadcast %cst_11 : f32 to vector<2x512xf32>
    %15 = arith.maximumf %13, %14 : vector<2x512xf32>
    %16 = arith.truncf %15 : vector<2x512xf32> to vector<2x512xbf16>
    %c0_12 = arith.constant 0 : index
    %c0_13 = arith.constant 0 : index
    %17 = vector.load %arg6[%c0_12, %c0_13] : memref<512x128xbf16, #tpu.memory_space<vmem>>, vector<512x128xbf16>
    %cst_14 = arith.constant dense<0.000000e+00> : vector<2x128xf32>
    %18 = tpu.matmul %16, %17, %cst_14 {dimension_numbers = #tpu.dot_dimension_numbers<[1], [0], [0], [1], [0, 0, 1, 1], [], []>} : vector<2x512xbf16>, vector<512x128xbf16>, vector<2x128xf32> -> vector<2x128xf32>
    %c0_15 = arith.constant 0 : index
    %c0_16 = arith.constant 0 : index
    %19 = vector.load %arg7[%c0_15, %c0_16] : memref<1x128xf32, #tpu.memory_space<vmem>>, vector<1x128xf32>
    %20 = vector.broadcast %19 : vector<1x128xf32> to vector<2x128xf32>
    %21 = arith.addf %18, %20 : vector<2x128xf32>
    %cst_17 = arith.constant 0.000000e+00 : f32
    %22 = vector.broadcast %cst_17 : f32 to vector<2x128xf32>
    %23 = arith.maximumf %21, %22 : vector<2x128xf32>
    %24 = math.absf %21 : vector<2x128xf32>
    %cst_18 = arith.constant 0.000000e+00 : f32
    %25 = vector.broadcast %cst_18 : f32 to vector<2x128xf32>
    %26 = arith.subf %25, %24 : vector<2x128xf32>
    %27 = math.exp %26 : vector<2x128xf32>
    %28 = math.log1p %27 : vector<2x128xf32>
    %29 = arith.addf %23, %28 : vector<2x128xf32>
    %cst_19 = arith.constant 1.000000e+00 : f32
    %30 = vector.broadcast %cst_19 : f32 to vector<2x128xf32>
    %31 = arith.addf %29, %30 : vector<2x128xf32>
    %c0_20 = arith.constant 0 : index
    %c0_21 = arith.constant 0 : index
    %32 = vector.load %arg8[%c0_20, %c0_21] : memref<2x128xf32, #tpu.memory_space<vmem>>, vector<2x128xf32>
    tpu.vector_store %arg8[%c0_20, %c0_21], %31 {strides = array<i32>} : memref<2x128xf32, #tpu.memory_space<vmem>>, vector<2x128xf32>,
    return
  }
  func.func @transform_0(%arg0: i32) -> (i32, i32) {
    %c0_i32 = arith.constant 0 : i32
    %c0_i32_0 = arith.constant 0 : i32
    return %arg0, %c0_i32 : i32, i32
  }
  func.func @transform_1(%arg0: i32) -> (i32, i32) {
    %c0_i32 = arith.constant 0 : i32
    %c0_i32_0 = arith.constant 0 : i32
    %c0_i32_1 = arith.constant 0 : i32
    return %c0_i32, %c0_i32_0 : i32, i32
  }
  func.func @transform_2(%arg0: i32) -> (i32, i32) {
    %c0_i32 = arith.constant 0 : i32
    %c0_i32_0 = arith.constant 0 : i32
    %c0_i32_1 = arith.constant 0 : i32
    return %c0_i32, %c0_i32_0 : i32, i32
  }
  func.func @transform_3(%arg0: i32) -> (i32, i32) {
    %c0_i32 = arith.constant 0 : i32
    %c0_i32_0 = arith.constant 0 : i32
    %c0_i32_1 = arith.constant 0 : i32
    return %c0_i32, %c0_i32_0 : i32, i32
  }
  func.func @transform_4(%arg0: i32) -> (i32, i32) {
    %c0_i32 = arith.constant 0 : i32
    %c0_i32_0 = arith.constant 0 : i32
    %c0_i32_1 = arith.constant 0 : i32
    return %c0_i32, %c0_i32_0 : i32, i32
  }
  func.func @transform_5(%arg0: i32) -> (i32, i32) {
    %c0_i32 = arith.constant 0 : i32
    %c0_i32_0 = arith.constant 0 : i32
    %c0_i32_1 = arith.constant 0 : i32
    return %c0_i32, %c0_i32_0 : i32, i32
  }
  func.func @transform_6(%arg0: i32) -> (i32, i32) {
    %c0_i32 = arith.constant 0 : i32
    %c0_i32_0 = arith.constant 0 : i32
    %c0_i32_1 = arith.constant 0 : i32
    return %c0_i32, %c0_i32_0 : i32, i32
  }
  func.func @transform_7(%arg0: i32) -> (i32, i32) {
    %c0_i32 = arith.constant 0 : i32
    %c0_i32_0 = arith.constant 0 : i32
    return %arg0, %c0_i32 : i32, i32
  }
}

</mosaic_0001>

<bundles_post_ra>
// kernel: actor_gaussian_forward.1
= control target key start
LH: loop header
LB: loop body
LE: loop exit
PB: predicated region body
PF: predicated region fallthrough
CT: control target
= control target key end

     0   :  { %12 = vsyncpa [#allocation3], 0  ;;  %s4505_s0 = inlined_call_operand.vmem [shape: bf16[2,256], index: 0, kind: input, shape index: {}]   ;;  %s4506_s1 = inlined_call_operand.hbm [shape: bf16[256,1024], index: 1, kind: input, shape index: {}]   ;;  %s4507_s2 = inlined_call_operand.vmem [shape: f32[1,1024], index: 2, kind: input, shape index: {}]   ;;  %s4508_s3 = inlined_call_operand.hbm [shape: bf16[1024,512], index: 3, kind: input, shape index: {}]   ;;  %s4509_s4 = inlined_call_operand.vmem [shape: f32[1,512], index: 4, kind: input, shape index: {}]   ;;  %s4510_s5 = inlined_call_operand.hbm [shape: bf16[512,128], index: 5, kind: input, shape index: {}]   ;;  %s4511_s6 = inlined_call_operand.vmem [shape: f32[1,128], index: 6, kind: input, shape index: {}]   ;;  %s4512_s7 = inlined_call_operand.vmem [shape: f32[2,128], index: 7, kind: output, shape index: {}]  }
   0x1   :  { %13 = vsyncpa [#allocation5], 0  ;;  %s4334_s24 = smov [#allocation4]   ;;  %s4264_s28 = scalar_lea.hbm %s4508_s3, 32768 }
   0x2   :  { %s35_s25 = sshll.u32 %s4334_s24, 4  ;;  %p4265_p0 = scmp.ne.s32.totalorder %s4508_s3, %s4264_s28  ;;  %s36_s25 = int_to_ptr.vmem [resolvable:$true] %s35_s25 }
   0x3   :  { %p4268_p1 = scmp.lt.u32.totalorder %s4264_s28, %s4508_s3 }
   0x5   :  { %p4270_p2 = pnand %p4268_p1, %p4265_p0 }
   0x7   :  { %4273 = shalt.err (!%p4270_p2)
}
   0x8   :  { %s4274_s10 = scalar_lea.vmem %s36_s25, 32768  ;;  %p4279_p4 = scmp.lt.s32.totalorder %s36_s25, %s36_s25 }
   0x9   :  { %p4275_p3 = scmp.ne.s32.totalorder %s36_s25, %s4274_s10  ;;  %p4280_p5 = scmp.lt.s32.totalorder %s4274_s10, %s4274_s10 }
   0xb   :  { %p4281_p6 = por %p4280_p5, %p4279_p4 }
   0xd   :  { %p4282_p7 = pnand %p4281_p6, %p4275_p3 }
   0xf   :  { %4285 = shalt.err (!%p4282_p7)
}
  0x10   :  { %s4335_s11 = smov 256   ;;  %s4336_s12 = smov 16  }
  0x11   :  { %41 = dma.hbm_to_vmem [thread:$0]  %s4508_s3, 32768, %s36_s25, [#allocation5], %s4335_s11, %s4335_s11, %s4336_s12  }
  0x12   :  { %s4337_s15 = smov [#allocation2]   ;;  %s4286_s19 = scalar_lea.hbm %s4506_s1, 16384 }
  0x13   :  { %s21_s16 = sshll.u32 %s4337_s15, 4  ;;  %p4287_p8 = scmp.ne.s32.totalorder %s4506_s1, %s4286_s19  ;;  %s22_s16 = int_to_ptr.vmem [resolvable:$true] %s21_s16 }
  0x14   :  { %p4290_p9 = scmp.lt.u32.totalorder %s4286_s19, %s4506_s1 }
  0x16   :  { %p4292_p10 = pnand %p4290_p9, %p4287_p8 }
  0x18   :  { %4295 = shalt.err (!%p4292_p10)
}
  0x19   :  { %s4296_s24 = scalar_lea.vmem %s22_s16, 16384  ;;  %p4301_p12 = scmp.lt.s32.totalorder %s22_s16, %s22_s16 }
  0x1a   :  { %p4297_p11 = scmp.ne.s32.totalorder %s22_s16, %s4296_s24  ;;  %p4302_p13 = scmp.lt.s32.totalorder %s4296_s24, %s4296_s24 }
  0x1c   :  { %p4303_p0 = por %p4302_p13, %p4301_p12 }
  0x1e   :  { %p4304_p1 = pnand %p4303_p0, %p4297_p11 }
  0x20   :  { %4307 = shalt.err (!%p4304_p1)
}
  0x21   :  { %s4338_s3 = smov 512   ;;  %s4339_s25 = smov 32  }
  0x22   :  { %27 = dma.hbm_to_vmem [thread:$0]  %s4506_s1, 16384, %s22_s16, [#allocation3], %s4338_s3, %s4338_s3, %s4339_s25  }
  0x23   :  { %s4340_s28 = smov [#allocation6]   ;;  %s4308_s9 = scalar_lea.hbm %s4510_s5, 4096 }
  0x24   :  { %s49_s29 = sshll.u32 %s4340_s28, 4  ;;  %p4309_p2 = scmp.ne.s32.totalorder %s4510_s5, %s4308_s9  ;;  %s50_s29 = int_to_ptr.vmem [resolvable:$true] %s49_s29 }
  0x25   :  { %p4312_p3 = scmp.lt.u32.totalorder %s4308_s9, %s4510_s5 }
  0x27   :  { %p4314_p4 = pnand %p4312_p3, %p4309_p2 }
  0x29   :  { %4317 = shalt.err (!%p4314_p4)
}
  0x2a   :  { %s4318_s14 = scalar_lea.vmem %s50_s29, 4096  ;;  %p4323_p6 = scmp.lt.s32.totalorder %s50_s29, %s50_s29 }
  0x2b   :  { %p4319_p5 = scmp.ne.s32.totalorder %s50_s29, %s4318_s14  ;;  %p4324_p7 = scmp.lt.s32.totalorder %s4318_s14, %s4318_s14 }
  0x2d   :  { %p4325_p8 = por %p4324_p7, %p4323_p6 }
  0x2f   :  { %p4326_p9 = pnand %p4325_p8, %p4319_p5 }
  0x31   :  { %4329 = shalt.err (!%p4326_p9)
}
  0x32   :  { %s4341_s1 = smov 64   ;;  %s4342_s15 = smov 4  }
  0x33   :  { %55 = dma.hbm_to_vmem [thread:$0]  %s4510_s5, 4096, %s50_s29, [#allocation5], %s4341_s1, %s4341_s1, %s4342_s15  }
  0x34   :  { %4330 = dma.done.wait [#allocation3], 16384  }
  0x35   :  { %4331 = vsyncadd [#allocation3], 4294950912 }
  0x36   :  { %4332 = dma.done.wait [#allocation5], 36864  }
  0x37   :  { %4333 = vsyncadd [#allocation5], 4294930432  ;;  %v69_v0 = vld [vmem:[#allocation2] sm:$0xff]  ;;  %v199_v9 = vlaneseq  ;;  %v4343_v10 = vmov 1966171168   ;;  %v70_v22 = vld [vmem:[#allocation2 + $0x8] sm:$0xff] }
  0x38   :  { %v73_v1 = vld [vmem:[#allocation2 + $0x20] sm:$0xff]  ;;  %v249_v11 = vunpack.c.l.s4 %v4343_v10  ;;  %v74_v24 = vld [vmem:[#allocation2 + $0x28] sm:$0xff] }
  0x39   :  { %v77_v2 = vld [vmem:[#allocation2 + $0x40] sm:$0xff]  ;;  %v3346_v3 = vcombine.high %v69_v0, %v73_v1  ;;  %v3345_v4 = vcombine.low %v69_v0, %v73_v1  ;;  %v4420_v16 = vshrl.u32 %v199_v9, 7  ;;  %v78_v26 = vld [vmem:[#allocation2 + $0x48] sm:$0xff]  ;;  %v3348_v28 = vcombine.high %v70_v22, %v74_v24 }
  0x3a   :  { %v81_v5 = vld [vmem:[#allocation2 + $0x60] sm:$0xff]  ;;  %v250_v17 = vunpack.c.0.s8 %v249_v11  ;;  %v3347_v29 = vcombine.low %v70_v22, %v74_v24  ;;  %v82_v31 = vld [vmem:[#allocation2 + $0x68] sm:$0xff] }
  0x3b   :  { %v3354_v6 = vcombine.high %v77_v2, %v81_v5  ;;  %v85_v7 = vld [vmem:[#allocation2 + $0x80] sm:$0xff]  ;;  %904 = vmatprep.subr.bf16.mxu0 %v3346_v3  ;;  %v3353_v12 = vcombine.low %v77_v2, %v81_v5  ;;  %v3356_v33 = vcombine.high %v78_v26, %v82_v31  ;;  %v86_v34 = vld [vmem:[#allocation2 + $0x88] sm:$0xff]  ;;  %945 = vmatprep.subr.bf16.mxu1 %v3348_v28 }
  0x3c   :  { %v89_v8 = vld [vmem:[#allocation2 + $0xa0] sm:$0xff]  ;;  %905 = vmatpush1.bf16.msra.mxu0 %v3345_v4  ;;  %v4423_v23 = vsub.s32 %v250_v17, %v4420_v16  ;;  %v90_v35 = vld [vmem:[#allocation2 + $0xa8] sm:$0xff]  ;;  %946 = vmatpush1.bf16.msra.mxu1 %v3347_v29  ;;  %v3355_v39 = vcombine.low %v78_v26, %v82_v31 }
  0x3d   :  { %906 = vmatprep.subr.bf16.mxu0 %v3354_v6  ;;  %v3362_v13 = vcombine.high %v85_v7, %v89_v8  ;;  %v93_v14 = vld [vmem:[#allocation2 + $0xc0] sm:$0xff]  ;;  %v3361_v18 = vcombine.low %v85_v7, %v89_v8  ;;  %v3364_v41 = vcombine.high %v86_v34, %v90_v35  ;;  %947 = vmatprep.subr.bf16.mxu1 %v3356_v33  ;;  %v94_v43 = vld [vmem:[#allocation2 + $0xc8] sm:$0xff] }
  0x3e   :  { %v97_v15 = vld [vmem:[#allocation2 + $0xe0] sm:$0xff]  ;;  %v98_v44 = vld [vmem:[#allocation2 + $0xe8] sm:$0xff]  ;;  %v3363_v47 = vcombine.low %v86_v34, %v90_v35 }
  0x3f   :  { %v3370_v19 = vcombine.high %v93_v14, %v97_v15  ;;  %v101_v20 = vld [vmem:[#allocation2 + $0x100] sm:$0xff]  ;;  %v3369_v27 = vcombine.low %v93_v14, %v97_v15  ;;  %v3372_v49 = vcombine.high %v94_v43, %v98_v44  ;;  %v102_v51 = vld [vmem:[#allocation2 + $0x108] sm:$0xff]  ;;  %v3371_v55 = vcombine.low %v94_v43, %v98_v44 }
  0x40   :  { %907 = vmatpush1.bf16.msra.mxu0 %v3353_v12  ;;  %v105_v21 = vld [vmem:[#allocation2 + $0x120] sm:$0xff]  ;;  %948 = vmatpush1.bf16.msra.mxu1 %v3355_v39  ;;  %v106_v52 = vld [vmem:[#allocation2 + $0x128] sm:$0xff] }
  0x41   :  { %908 = vmatprep.subr.bf16.mxu0 %v3362_v13  ;;  %v4428_v25 = vld.sshfl [vmem:[%s4505_s0] sm:$0x11 pattern:$0x75316420]  ;;  %v3378_v32 = vcombine.high %v101_v20, %v105_v21  ;;  %v3377_v40 = vcombine.low %v101_v20, %v105_v21  ;;  %949 = vmatprep.subr.bf16.mxu1 %v3364_v41  ;;  %v3380_v57 = vcombine.high %v102_v51, %v106_v52  ;;  %v110_v59 = vld [vmem:[#allocation2 + $0x148] sm:$0xff] }
  0x42   :  { %v247_v30 = vcombine.high %v4428_v25, %v4428_v25  ;;  %v109_v36 = vld [vmem:[#allocation2 + $0x140] sm:$0xff]  ;;  %v114_v60 = vld [vmem:[#allocation2 + $0x168] sm:$0xff]  ;;  %v3379_v63 = vcombine.low %v102_v51, %v106_v52 }
  0x43   :  { %v113_v37 = vld [vmem:[#allocation2 + $0x160] sm:$0xff]  ;;  %v3388_v1 = vcombine.high %v110_v59, %v114_v60  ;;  %v118_v3 = vld [vmem:[#allocation2 + $0x188] sm:$0xff]  ;;  %v3387_v7 = vcombine.low %v110_v59, %v114_v60 }
  0x44   :  { %909 = vmatpush1.bf16.msra.mxu0 %v3361_v18  ;;  %v4433_v38 = vrot.slane %v247_v30, %v4423_v23  ;;  %v3386_v42 = vcombine.high %v109_v36, %v113_v37  ;;  %v117_v45 = vld [vmem:[#allocation2 + $0x180] sm:$0xff]  ;;  %v3385_v48 = vcombine.low %v109_v36, %v113_v37  ;;  %950 = vmatpush1.bf16.msra.mxu1 %v3363_v47  ;;  %v122_v4 = vld [vmem:[#allocation2 + $0x1a8] sm:$0xff] }
  0x45   :  { %910 = vmatprep.subr.bf16.mxu0 %v3370_v19  ;;  %v121_v46 = vld [vmem:[#allocation2 + $0x1a0] sm:$0xff]  ;;  %951 = vmatprep.subr.bf16.mxu1 %v3372_v49  ;;  %v3396_v9 = vcombine.high %v118_v3, %v122_v4  ;;  %v126_v11 = vld [vmem:[#allocation2 + $0x1c8] sm:$0xff]  ;;  %v3395_v15 = vcombine.low %v118_v3, %v122_v4 }
  0x46   :  { %936 = vmatprep.mubr.bf16.mxu0 %v4433_v38  ;;  %977 = vmatprep.mubr.bf16.mxu1 %v4433_v38  ;;  %v3394_v50 = vcombine.high %v117_v45, %v121_v46  ;;  %v125_v53 = vld [vmem:[#allocation2 + $0x1c0] sm:$0xff]  ;;  %v3393_v56 = vcombine.low %v117_v45, %v121_v46  ;;  %v130_v12 = vld [vmem:[#allocation2 + $0x1e8] sm:$0xff] }
  0x47   :  { %v129_v54 = vld [vmem:[#allocation2 + $0x1e0] sm:$0xff]  ;;  %v3404_v18 = vcombine.high %v126_v11, %v130_v12  ;;  %v134_v20 = vld [vmem:[#allocation2 + $0x208] sm:$0xff]  ;;  %v3403_v26 = vcombine.low %v126_v11, %v130_v12  ;;  %v4439_v11 = vrot.slane %v4428_v25, %v4423_v23 }
  0x48   :  { %911 = vmatpush1.bf16.msra.mxu0 %v3369_v27  ;;  %v3402_v58 = vcombine.high %v125_v53, %v129_v54  ;;  %v133_v61 = vld [vmem:[#allocation2 + $0x200] sm:$0xff]  ;;  %952 = vmatpush1.bf16.msra.mxu1 %v3371_v55  ;;  %v3401_v0 = vcombine.low %v125_v53, %v129_v54  ;;  %v138_v21 = vld [vmem:[#allocation2 + $0x228] sm:$0xff] }
  0x49   :  { %912 = vmatprep.subr.bf16.mxu0 %v3378_v32  ;;  %v137_v62 = vld [vmem:[#allocation2 + $0x220] sm:$0xff]  ;;  %953 = vmatprep.subr.bf16.mxu1 %v3380_v57  ;;  %v3412_v28 = vcombine.high %v134_v20, %v138_v21  ;;  %v142_v30 = vld [vmem:[#allocation2 + $0x248] sm:$0xff]  ;;  %v3411_v34 = vcombine.low %v134_v20, %v138_v21  ;;  %v91_v20 = vld [vmem:[#allocation2 + $0xb0] sm:$0xff] }
  0x4a   :  { %v3410_v2 = vcombine.high %v133_v61, %v137_v62  ;;  %v141_v5 = vld [vmem:[#allocation2 + $0x240] sm:$0xff]  ;;  %v3409_v8 = vcombine.low %v133_v61, %v137_v62  ;;  %v146_v31 = vld [vmem:[#allocation2 + $0x268] sm:$0xff] }
  0x4b   :  { %v145_v6 = vld [vmem:[#allocation2 + $0x260] sm:$0xff]  ;;  %v3420_v36 = vcombine.high %v142_v30, %v146_v31  ;;  %v150_v39 = vld [vmem:[#allocation2 + $0x288] sm:$0xff]  ;;  %v3419_v43 = vcombine.low %v142_v30, %v146_v31 }
  0x4c   :  { %913 = vmatpush1.bf16.msra.mxu0 %v3377_v40  ;;  %954 = vmatpush1.bf16.msra.mxu1 %v3379_v63  ;;  %v3418_v10 = vcombine.high %v141_v5, %v145_v6  ;;  %v149_v13 = vld [vmem:[#allocation2 + $0x280] sm:$0xff]  ;;  %v3417_v17 = vcombine.low %v141_v5, %v145_v6  ;;  %v154_v40 = vld [vmem:[#allocation2 + $0x2a8] sm:$0xff] }
  0x4d   :  { %914 = vmatprep.subr.bf16.mxu0 %v3386_v42  ;;  %955 = vmatprep.subr.bf16.mxu1 %v3388_v1  ;;  %v153_v14 = vld [vmem:[#allocation2 + $0x2a0] sm:$0xff]  ;;  %v3428_v45 = vcombine.high %v150_v39, %v154_v40  ;;  %v158_v47 = vld [vmem:[#allocation2 + $0x2c8] sm:$0xff]  ;;  %v3427_v51 = vcombine.low %v150_v39, %v154_v40  ;;  %v71_v1 = vld [vmem:[#allocation2 + $0x10] sm:$0xff] }
  0x4e   :  { %v3426_v19 = vcombine.high %v149_v13, %v153_v14  ;;  %v157_v22 = vld [vmem:[#allocation2 + $0x2c0] sm:$0xff]  ;;  %v3425_v27 = vcombine.low %v149_v13, %v153_v14  ;;  %v166_v55 = vld [vmem:[#allocation2 + $0x308] sm:$0xff] }
  0x4f   :  { %v161_v24 = vld [vmem:[#allocation2 + $0x2e0] sm:$0xff]  ;;  %v174_v63 = vld [vmem:[#allocation2 + $0x348] sm:$0xff] }
  0x50   :  { %915 = vmatpush1.bf16.msra.mxu0 %v3385_v48  ;;  %956 = vmatpush1.bf16.msra.mxu1 %v3387_v7  ;;  %v3434_v29 = vcombine.high %v157_v22, %v161_v24  ;;  %v165_v32 = vld [vmem:[#allocation2 + $0x300] sm:$0xff]  ;;  %v3433_v35 = vcombine.low %v157_v22, %v161_v24  ;;  %v162_v48 = vld [vmem:[#allocation2 + $0x2e8] sm:$0xff]  ;;  %v72_v24 = vld [vmem:[#allocation2 + $0x18] sm:$0xff] }
  0x51   :  { %916 = vmatprep.subr.bf16.mxu0 %v3394_v50  ;;  %957 = vmatprep.subr.bf16.mxu1 %v3396_v9  ;;  %v169_v33 = vld [vmem:[#allocation2 + $0x320] sm:$0xff]  ;;  %v3436_v53 = vcombine.high %v158_v47, %v162_v48  ;;  %v3435_v59 = vcombine.low %v158_v47, %v162_v48  ;;  %v182_v6 = vld [vmem:[#allocation2 + $0x388] sm:$0xff]  ;;  %v79_v9 = vld [vmem:[#allocation2 + $0x50] sm:$0xff] }
  0x52   :  { %v3442_v37 = vcombine.high %v165_v32, %v169_v33  ;;  %v173_v41 = vld [vmem:[#allocation2 + $0x340] sm:$0xff]  ;;  %v3441_v44 = vcombine.low %v165_v32, %v169_v33  ;;  %v186_v7 = vld [vmem:[#allocation2 + $0x3a8] sm:$0xff]  ;;  %v80_v33 = vld [vmem:[#allocation2 + $0x58] sm:$0xff] }
  0x53   :  { %v177_v42 = vld [vmem:[#allocation2 + $0x360] sm:$0xff]  ;;  %v3460_v13 = vcombine.high %v182_v6, %v186_v7  ;;  %v3459_v21 = vcombine.low %v182_v6, %v186_v7  ;;  %v119_v48 = vld [vmem:[#allocation2 + $0x190] sm:$0xff]  ;;  %v120_v6 = vld [vmem:[#allocation2 + $0x198] sm:$0xff] }
  0x54   :  { %917 = vmatpush1.bf16.msra.mxu0 %v3393_v56  ;;  %958 = vmatpush1.bf16.msra.mxu1 %v3395_v15  ;;  %v3450_v46 = vcombine.high %v173_v41, %v177_v42  ;;  %v181_v49 = vld [vmem:[#allocation2 + $0x380] sm:$0xff]  ;;  %v3449_v52 = vcombine.low %v173_v41, %v177_v42  ;;  %v170_v56 = vld [vmem:[#allocation2 + $0x328] sm:$0xff]  ;;  %v88_v42 = vld [vmem:[#allocation2 + $0x98] sm:$0xff] }
  0x55   :  { %918 = vmatprep.subr.bf16.mxu0 %v3402_v58  ;;  %959 = vmatprep.subr.bf16.mxu1 %v3404_v18  ;;  %v185_v50 = vld [vmem:[#allocation2 + $0x3a0] sm:$0xff]  ;;  %v3444_v61 = vcombine.high %v166_v55, %v170_v56  ;;  %v3443_v3 = vcombine.low %v166_v55, %v170_v56  ;;  %v190_v15 = vld [vmem:[#allocation2 + $0x3c8] sm:$0xff]  ;;  %v104_v55 = vld [vmem:[#allocation2 + $0x118] sm:$0xff] }
  0x56   :  { %v3458_v54 = vcombine.high %v181_v49, %v185_v50  ;;  %v189_v57 = vld [vmem:[#allocation2 + $0x3c0] sm:$0xff]  ;;  %v3457_v60 = vcombine.low %v181_v49, %v185_v50  ;;  %v123_v49 = vld [vmem:[#allocation2 + $0x1b0] sm:$0xff]  ;;  %v108_v56 = vld [vmem:[#allocation2 + $0x138] sm:$0xff] }
  0x57   :  { %v193_v58 = vld [vmem:[#allocation2 + $0x3e0] sm:$0xff]  ;;  %v124_v7 = vld [vmem:[#allocation2 + $0x1b8] sm:$0xff] }
  0x58   :  { %919 = vmatpush1.bf16.msra.mxu0 %v3401_v0  ;;  %960 = vmatpush1.bf16.msra.mxu1 %v3403_v26  ;;  %v3466_v62 = vcombine.high %v189_v57, %v193_v58  ;;  %v178_v0 = vld [vmem:[#allocation2 + $0x368] sm:$0xff]  ;;  %v3465_v4 = vcombine.low %v189_v57, %v193_v58  ;;  %v76_v26 = vld [vmem:[#allocation2 + $0x38] sm:$0xff]  ;;  %v127_v58 = vld [vmem:[#allocation2 + $0x1d0] sm:$0xff] }
  0x59   :  { %920 = vmatprep.subr.bf16.mxu0 %v3410_v2  ;;  %961 = vmatprep.subr.bf16.mxu1 %v3412_v28  ;;  %v75_v2 = vld [vmem:[#allocation2 + $0x30] sm:$0xff]  ;;  %v3452_v5 = vcombine.high %v174_v63, %v178_v0  ;;  %v3451_v12 = vcombine.low %v174_v63, %v178_v0  ;;  %v3352_v31 = vcombine.high %v72_v24, %v76_v26  ;;  %v116_v63 = vld [vmem:[#allocation2 + $0x178] sm:$0xff] }
  0x5a   :  { %v3349_v14 = vcombine.low %v71_v1, %v75_v2  ;;  %v99_v28 = vld [vmem:[#allocation2 + $0xf0] sm:$0xff]  ;;  %v3397_v0 = vcombine.low %v119_v48, %v123_v49 }
  0x5c   :  { %921 = vmatpush1.bf16.msra.mxu0 %v3409_v8  ;;  %962 = vmatpush1.bf16.msra.mxu1 %v3411_v34  ;;  %v3350_v8 = vcombine.high %v71_v1, %v75_v2  ;;  %v84_v34 = vld [vmem:[#allocation2 + $0x78] sm:$0xff]  ;;  %v135_v1 = vld [vmem:[#allocation2 + $0x210] sm:$0xff] }
  0x5d   :  { %922 = vmatprep.subr.bf16.mxu0 %v3418_v10  ;;  %963 = vmatprep.subr.bf16.mxu1 %v3420_v36  ;;  %v83_v10 = vld [vmem:[#allocation2 + $0x70] sm:$0xff]  ;;  %v3360_v40 = vcombine.high %v80_v33, %v84_v34 }
  0x5e   :  { %v3358_v18 = vcombine.high %v79_v9, %v83_v10  ;;  %v3357_v23 = vcombine.low %v79_v9, %v83_v10  ;;  %v107_v36 = vld [vmem:[#allocation2 + $0x130] sm:$0xff] }
  0x5f   :  { %v139_v2 = vld [vmem:[#allocation2 + $0x230] sm:$0xff] }
  0x60   :  { %923 = vmatpush1.bf16.msra.mxu0 %v3417_v17  ;;  %964 = vmatpush1.bf16.msra.mxu1 %v3419_v43  ;;  %v194_v17 = vld [vmem:[#allocation2 + $0x3e8] sm:$0xff]  ;;  %v92_v43 = vld [vmem:[#allocation2 + $0xb8] sm:$0xff]  ;;  %v143_v9 = vld [vmem:[#allocation2 + $0x250] sm:$0xff] }
  0x61   :  { %924 = vmatprep.subr.bf16.mxu0 %v3426_v19  ;;  %965 = vmatprep.subr.bf16.mxu1 %v3428_v45  ;;  %v87_v19 = vld [vmem:[#allocation2 + $0x90] sm:$0xff]  ;;  %v3468_v22 = vcombine.high %v190_v15, %v194_v17  ;;  %v3368_v50 = vcombine.high %v88_v42, %v92_v43 }
  0x62   :  { %v3366_v25 = vcombine.high %v87_v19, %v91_v20  ;;  %v3365_v30 = vcombine.low %v87_v19, %v91_v20  ;;  %v115_v45 = vld [vmem:[#allocation2 + $0x170] sm:$0xff] }
  0x63   :  { %v147_v10 = vld [vmem:[#allocation2 + $0x270] sm:$0xff] }
  0x64   :  { %925 = vmatpush1.bf16.msra.mxu0 %v3425_v27  ;;  %966 = vmatpush1.bf16.msra.mxu1 %v3427_v51  ;;  %v95_v27 = vld [vmem:[#allocation2 + $0xd0] sm:$0xff]  ;;  %v96_v51 = vld [vmem:[#allocation2 + $0xd8] sm:$0xff] }
  0x65   :  { %926 = vmatprep.subr.bf16.mxu0 %v3434_v29  ;;  %967 = vmatprep.subr.bf16.mxu1 %v3436_v53  ;;  %v3467_v29 = vcombine.low %v190_v15, %v194_v17  ;;  %v3374_v32 = vcombine.high %v95_v27, %v99_v28  ;;  %v3373_v39 = vcombine.low %v95_v27, %v99_v28  ;;  %v128_v15 = vld [vmem:[#allocation2 + $0x1d8] sm:$0xff]  ;;  %v151_v19 = vld [vmem:[#allocation2 + $0x290] sm:$0xff] }
  0x66   :  { %v132_v17 = vld [vmem:[#allocation2 + $0x1f8] sm:$0xff]  ;;  %v155_v20 = vld [vmem:[#allocation2 + $0x2b0] sm:$0xff] }
  0x67   :  { %v159_v27 = vld [vmem:[#allocation2 + $0x2d0] sm:$0xff] }
  0x68   :  { %927 = vmatpush1.bf16.msra.mxu0 %v3433_v35  ;;  %968 = vmatpush1.bf16.msra.mxu1 %v3435_v59  ;;  %v103_v35 = vld [vmem:[#allocation2 + $0x110] sm:$0xff] }
  0x69   :  { %928 = vmatprep.subr.bf16.mxu0 %v3442_v37  ;;  %969 = vmatprep.subr.bf16.mxu1 %v3444_v61  ;;  %v3351_v37 = vcombine.low %v72_v24, %v76_v26  ;;  %v3382_v41 = vcombine.high %v103_v35, %v107_v36  ;;  %v3381_v47 = vcombine.low %v103_v35, %v107_v36  ;;  %v131_v59 = vld [vmem:[#allocation2 + $0x1f0] sm:$0xff]  ;;  %v140_v24 = vld [vmem:[#allocation2 + $0x238] sm:$0xff] }
  0x6a   :  { %v3421_v26 = vcombine.low %v143_v9, %v147_v10  ;;  %v163_v28 = vld [vmem:[#allocation2 + $0x2f0] sm:$0xff] }
  0x6b   :  { %v167_v35 = vld [vmem:[#allocation2 + $0x310] sm:$0xff] }
  0x6c   :  { %929 = vmatpush1.bf16.msra.mxu0 %v3441_v44  ;;  %970 = vmatpush1.bf16.msra.mxu1 %v3443_v3  ;;  %v111_v44 = vld [vmem:[#allocation2 + $0x150] sm:$0xff]  ;;  %v3384_v3 = vcombine.high %v104_v55, %v108_v56 }
  0x6d   :  { %930 = vmatprep.subr.bf16.mxu0 %v3450_v46  ;;  %971 = vmatprep.subr.bf16.mxu1 %v3452_v5  ;;  %v3359_v46 = vcombine.low %v80_v33, %v84_v34  ;;  %v3390_v53 = vcombine.high %v111_v44, %v115_v45  ;;  %v3389_v57 = vcombine.low %v111_v44, %v115_v45  ;;  %v148_v33 = vld [vmem:[#allocation2 + $0x278] sm:$0xff]  ;;  %v171_v36 = vld [vmem:[#allocation2 + $0x330] sm:$0xff] }
  0x6e   :  { %v3383_v5 = vcombine.low %v104_v55, %v108_v56  ;;  %v3429_v34 = vcombine.low %v151_v19, %v155_v20  ;;  %v175_v44 = vld [vmem:[#allocation2 + $0x350] sm:$0xff] }
  0x6f   :  { %v179_v45 = vld [vmem:[#allocation2 + $0x370] sm:$0xff] }
  0x70   :  { %931 = vmatpush1.bf16.msra.mxu0 %v3449_v52  ;;  %972 = vmatpush1.bf16.msra.mxu1 %v3451_v12  ;;  %v100_v52 = vld [vmem:[#allocation2 + $0xf8] sm:$0xff]  ;;  %v3454_v55 = vcombine.high %v175_v44, %v179_v45 }
  0x71   :  { %932 = vmatprep.subr.bf16.mxu0 %v3458_v54  ;;  %973 = vmatprep.subr.bf16.mxu1 %v3460_v13  ;;  %v3367_v54 = vcombine.low %v88_v42, %v92_v43  ;;  %v3375_v61 = vcombine.low %v96_v51, %v100_v52  ;;  %v3414_v13 = vcombine.high %v135_v1, %v139_v2  ;;  %v156_v42 = vld [vmem:[#allocation2 + $0x2b8] sm:$0xff] }
  0x72   :  { %v3437_v43 = vcombine.low %v159_v27, %v163_v28 }
  0x74   :  { %933 = vmatpush1.bf16.msra.mxu0 %v3457_v60  ;;  %974 = vmatpush1.bf16.msra.mxu1 %v3459_v21  ;;  %v3398_v60 = vcombine.high %v119_v48, %v123_v49  ;;  %v3400_v21 = vcombine.high %v120_v6, %v124_v7  ;;  %v160_v49 = vld [vmem:[#allocation2 + $0x2d8] sm:$0xff] }
  0x75   :  { %934 = vmatprep.subr.bf16.mxu0 %v3466_v62  ;;  %975 = vmatprep.subr.bf16.mxu1 %v3468_v22  ;;  %v112_v62 = vld [vmem:[#allocation2 + $0x158] sm:$0xff]  ;;  %v3422_v22 = vcombine.high %v143_v9, %v147_v10 }
  0x76   :  { %v3392_v12 = vcombine.high %v112_v62, %v116_v63 }
  0x78   :  { %935 = vmatpush1.bf16.msra.mxu0 %v3465_v4  ;;  %976 = vmatpush1.bf16.msra.mxu1 %v3467_v29  ;;  %v3406_v4 = vcombine.high %v127_v58, %v131_v59  ;;  %v3408_v29 = vcombine.high %v128_v15, %v132_v17 }
  0x79   :  { %986 = vmatprep.subr.bf16.mxu0 %v3350_v8  ;;  %1027 = vmatprep.subr.bf16.mxu1 %v3352_v31  ;;  %v3405_v8 = vcombine.low %v127_v58, %v131_v59  ;;  %v3407_v31 = vcombine.low %v128_v15, %v132_v17  ;;  %v172_v58 = vld [vmem:[#allocation2 + $0x338] sm:$0xff]  ;;  %v3453_v59 = vcombine.low %v175_v44, %v179_v45  ;;  %v3852_v17 = vld [vmem:[#allocation4 + $0x24] ss:$16 sps:$4 sm:$0xff]   ;;  %v3886_v45 = vld [vmem:[#allocation4 + $0xe0] ss:$16 sps:$4 sm:$0xff]  }
  0x7a   :  { %v196_v15 = vld [vmem:[#allocation2 + $0x3f8] sm:$0xff] }
  0x7b   :  { %937 = vmatmul.mubr.bf16.vlgmr.msra.gmra.mrb[0].mxu0 %v4439_v11  ;;  %978 = vmatmul.mubr.bf16.vlgmr.msra.gmra.mrb[0].mxu1 %v4439_v11  ;;  %v3879_v44 = vld [vmem:[#allocation4 + $0xac] ss:$16 sps:$4 sm:$0xff]  }
  0x7c   :  { %987 = vmatpush1.bf16.msra.mxu0 %v3349_v14  ;;  %1018 = vmatprep.mubr.bf16.mxu0 %v4433_v38  ;;  %v3391_v14 = vcombine.low %v112_v62, %v116_v63 }
  0x7d   :  { %988 = vmatprep.subr.bf16.mxu0 %v3358_v18  ;;  %1028 = vmatpush1.bf16.msra.mxu1 %v3351_v37  ;;  %v3413_v18 = vcombine.low %v135_v1, %v139_v2  ;;  %v180_v1 = vld [vmem:[#allocation2 + $0x378] sm:$0xff] }
  0x7e   :  { %1059 = vmatprep.mubr.bf16.mxu1 %v4433_v38  ;;  %1029 = vmatprep.subr.bf16.mxu1 %v3360_v40  ;;  %v3376_v38 = vcombine.high %v96_v51, %v100_v52  ;;  %v3445_v51 = vcombine.low %v167_v35, %v171_v36  ;;  %v183_v52 = vld [vmem:[#allocation2 + $0x390] sm:$0xff] }
  0x80   :  { %989 = vmatpush1.bf16.msra.mxu0 %v3357_v23  ;;  %v3399_v23 = vcombine.low %v120_v6, %v124_v7  ;;  %v184_v6 = vld [vmem:[#allocation2 + $0x398] sm:$0xff] }
  0x81   :  { %990 = vmatprep.subr.bf16.mxu0 %v3366_v25  ;;  %1030 = vmatpush1.bf16.msra.mxu1 %v3359_v46  ;;  %v136_v25 = vld [vmem:[#allocation2 + $0x218] sm:$0xff] }
  0x82   :  { %1031 = vmatprep.subr.bf16.mxu1 %v3368_v50  ;;  %v3416_v37 = vcombine.high %v136_v25, %v140_v24  ;;  %v3415_v40 = vcombine.low %v136_v25, %v140_v24  ;;  %v164_v50 = vld [vmem:[#allocation2 + $0x2f8] sm:$0xff]  ;;  %v3856_v25 = vld [vmem:[#allocation4 + $0x40] ss:$16 sps:$4 sm:$0xff]  }
  0x83   :  { %v3439_v63 = vcombine.low %v160_v49, %v164_v50  ;;  %v188_v7 = vld [vmem:[#allocation2 + $0x3b8] sm:$0xff] }
  0x84   :  { %991 = vmatpush1.bf16.msra.mxu0 %v3365_v30  ;;  %v3430_v30 = vcombine.high %v151_v19, %v155_v20  ;;  %v3850_v19 = vld [vmem:[#allocation4 + $0x20] ss:$16 sps:$4 sm:$0xff]   ;;  %v3463_v20 = vcombine.low %v184_v6, %v188_v7 }
  0x85   :  { %992 = vmatprep.subr.bf16.mxu0 %v3374_v32  ;;  %1032 = vmatpush1.bf16.msra.mxu1 %v3367_v54  ;;  %v144_v32 = vld [vmem:[#allocation2 + $0x258] sm:$0xff] }
  0x86   :  { %1033 = vmatprep.subr.bf16.mxu1 %v3376_v38  ;;  %v3424_v46 = vcombine.high %v144_v32, %v148_v33  ;;  %v3423_v48 = vcombine.low %v144_v32, %v148_v33  ;;  %v191_v38 = vld [vmem:[#allocation2 + $0x3d0] sm:$0xff]  ;;  %v3861_v32 = vld [vmem:[#allocation4 + $0x4c] ss:$16 sps:$4 sm:$0xff]  }
  0x87   :  { %v3868_v33 = vld [vmem:[#allocation4 + $0x80] ss:$16 sps:$4 sm:$0xff]  }
  0x88   :  { %993 = vmatpush1.bf16.msra.mxu0 %v3373_v39  ;;  %v3438_v39 = vcombine.high %v159_v27, %v163_v28  ;;  %v3847_v27 = vld [vmem:[#allocation4 + $0x8] ss:$16 sps:$4 sm:$0xff]   ;;  %v3855_v28 = vld [vmem:[#allocation4 + $0x2c] ss:$16 sps:$4 sm:$0xff]  }
  0x89   :  { %994 = vmatprep.subr.bf16.mxu0 %v3382_v41  ;;  %1034 = vmatpush1.bf16.msra.mxu1 %v3375_v61  ;;  %v152_v41 = vld [vmem:[#allocation2 + $0x298] sm:$0xff]  ;;  %v3440_v61 = vcombine.high %v160_v49, %v164_v50  ;;  %v3892_v49 = vld [vmem:[#allocation4 + $0x100] ss:$16 sps:$4 sm:$0xff]  }
  0x8a   :  { %1035 = vmatprep.subr.bf16.mxu1 %v3384_v3  ;;  %v3432_v54 = vcombine.high %v152_v41, %v156_v42  ;;  %v3431_v56 = vcombine.low %v152_v41, %v156_v42  ;;  %v3873_v41 = vld [vmem:[#allocation4 + $0x8c] ss:$16 sps:$4 sm:$0xff]   ;;  %v3871_v42 = vld [vmem:[#allocation4 + $0x88] ss:$16 sps:$4 sm:$0xff]  }
  0x8b   :  { %v3883_v50 = vld [vmem:[#allocation4 + $0xc8] ss:$16 sps:$4 sm:$0xff]  }
  0x8c   :  { %995 = vmatpush1.bf16.msra.mxu0 %v3381_v47  ;;  %v3446_v47 = vcombine.high %v167_v35, %v171_v36  ;;  %v3859_v35 = vld [vmem:[#allocation4 + $0x48] ss:$16 sps:$4 sm:$0xff]   ;;  %v3867_v36 = vld [vmem:[#allocation4 + $0x6c] ss:$16 sps:$4 sm:$0xff]  }
  0x8d   :  { %996 = vmatprep.subr.bf16.mxu0 %v3390_v53  ;;  %1036 = vmatpush1.bf16.msra.mxu1 %v3383_v5  ;;  %v187_v53 = vld [vmem:[#allocation2 + $0x3b0] sm:$0xff] }
  0x8e   :  { %1037 = vmatprep.subr.bf16.mxu1 %v3392_v12  ;;  %v3462_v62 = vcombine.high %v183_v52, %v187_v53  ;;  %v3461_v2 = vcombine.low %v183_v52, %v187_v53  ;;  %v3844_v12 = vld [vmem:[#allocation4] ss:$16 sps:$4 sm:$0xff]   ;;  %v3891_v52 = vld [vmem:[#allocation4 + $0xec] ss:$16 sps:$4 sm:$0xff]  }
  0x8f   :  { %v3898_v53 = vld [vmem:[#allocation4 + $0x120] ss:$16 sps:$4 sm:$0xff]  }
  0x90   :  { %997 = vmatpush1.bf16.msra.mxu0 %v3389_v57  ;;  %v168_v57 = vld [vmem:[#allocation2 + $0x318] sm:$0xff] }
  0x91   :  { %998 = vmatprep.subr.bf16.mxu0 %v3398_v60  ;;  %1038 = vmatpush1.bf16.msra.mxu1 %v3391_v14  ;;  %v195_v60 = vld [vmem:[#allocation2 + $0x3f0] sm:$0xff]  ;;  %v3448_v3 = vcombine.high %v168_v57, %v172_v58  ;;  %v3447_v5 = vcombine.low %v168_v57, %v172_v58  ;;  %v192_v14 = vld [vmem:[#allocation2 + $0x3d8] sm:$0xff] }
  0x92   :  { %1039 = vmatprep.subr.bf16.mxu1 %v3400_v21  ;;  %v3469_v9 = vcombine.low %v191_v38, %v195_v60  ;;  %v3858_v21 = vld [vmem:[#allocation4 + $0x44] ss:$16 sps:$4 sm:$0xff]   ;;  %v3471_v24 = vcombine.low %v192_v14, %v196_v15  ;;  %v3904_v57 = vld [vmem:[#allocation4 + $0x140] ss:$16 sps:$4 sm:$0xff]   ;;  %v3895_v58 = vld [vmem:[#allocation4 + $0x108] ss:$16 sps:$4 sm:$0xff]  }
  0x94   :  { %999 = vmatpush1.bf16.msra.mxu0 %v3397_v0  ;;  %v176_v0 = vld [vmem:[#allocation2 + $0x358] sm:$0xff] }
  0x95   :  { %1000 = vmatprep.subr.bf16.mxu0 %v3406_v4  ;;  %1040 = vmatpush1.bf16.msra.mxu1 %v3399_v23  ;;  %v3470_v4 = vcombine.high %v191_v38, %v195_v60  ;;  %v3456_v10 = vcombine.high %v176_v0, %v180_v1  ;;  %v3849_v23 = vld [vmem:[#allocation4 + $0xc] ss:$16 sps:$4 sm:$0xff]   ;;  %v3910_v60 = vld [vmem:[#allocation4 + $0x160] ss:$16 sps:$4 sm:$0xff]  }
  0x96   :  { %1041 = vmatprep.subr.bf16.mxu1 %v3408_v29  ;;  %v3862_v29 = vld [vmem:[#allocation4 + $0x60] ss:$16 sps:$4 sm:$0xff]   ;;  %v3903_v38 = vld [vmem:[#allocation4 + $0x12c] ss:$16 sps:$4 sm:$0xff]  }
  0x98   :  { %1001 = vmatpush1.bf16.msra.mxu0 %v3405_v8  ;;  %v3846_v8 = vld [vmem:[#allocation4 + $0x4] ss:$16 sps:$4 sm:$0xff]  }
  0x99   :  { %1002 = vmatprep.subr.bf16.mxu0 %v3414_v13  ;;  %1042 = vmatpush1.bf16.msra.mxu1 %v3407_v31  ;;  %v3455_v13 = vcombine.low %v176_v0, %v180_v1  ;;  %v3853_v31 = vld [vmem:[#allocation4 + $0x28] ss:$16 sps:$4 sm:$0xff]   ;;  %v3916_v0 = vld [vmem:[#allocation4 + $0x180] ss:$16 sps:$4 sm:$0xff]   ;;  %v3924_v1 = vld [vmem:[#allocation4 + $0x1a4] ss:$16 sps:$4 sm:$0xff]  }
  0x9a   :  { %1043 = vmatprep.subr.bf16.mxu1 %v3416_v37  ;;  %v3874_v37 = vld [vmem:[#allocation4 + $0xa0] ss:$16 sps:$4 sm:$0xff]  }
  0x9c   :  { %1003 = vmatpush1.bf16.msra.mxu0 %v3413_v18  ;;  %v3464_v18 = vcombine.high %v184_v6, %v188_v7  ;;  %v3913_v6 = vld [vmem:[#allocation4 + $0x168] ss:$16 sps:$4 sm:$0xff]   ;;  %v3921_v7 = vld [vmem:[#allocation4 + $0x18c] ss:$16 sps:$4 sm:$0xff]  }
  0x9d   :  { %1004 = vmatprep.subr.bf16.mxu0 %v3422_v22  ;;  %1044 = vmatpush1.bf16.msra.mxu1 %v3415_v40  ;;  %v3472_v22 = vcombine.high %v192_v14, %v196_v15  ;;  %v3882_v40 = vld [vmem:[#allocation4 + $0xc4] ss:$16 sps:$4 sm:$0xff]   ;;  %v3925_v15 = vld [vmem:[#allocation4 + $0x1a8] ss:$16 sps:$4 sm:$0xff]  }
  0x9e   :  { %1045 = vmatprep.subr.bf16.mxu1 %v3424_v46  ;;  %v3877_v46 = vld [vmem:[#allocation4 + $0xa8] ss:$16 sps:$4 sm:$0xff]   ;;  %v3942_v14 = vld [vmem:[#allocation4 + $0x204] ss:$16 sps:$4 sm:$0xff]  }
  0xa0   :  { %1005 = vmatpush1.bf16.msra.mxu0 %v3421_v26  ;;  %v3864_v26 = vld [vmem:[#allocation4 + $0x64] ss:$16 sps:$4 sm:$0xff]  }
  0xa1   :  { %1006 = vmatprep.subr.bf16.mxu0 %v3430_v30  ;;  %1046 = vmatpush1.bf16.msra.mxu1 %v3423_v48  ;;  %v3870_v30 = vld [vmem:[#allocation4 + $0x84] ss:$16 sps:$4 sm:$0xff]   ;;  %v3885_v48 = vld [vmem:[#allocation4 + $0xcc] ss:$16 sps:$4 sm:$0xff]  }
  0xa2   :  { %1047 = vmatprep.subr.bf16.mxu1 %v3432_v54  ;;  %v3889_v54 = vld [vmem:[#allocation4 + $0xe8] ss:$16 sps:$4 sm:$0xff]  }
  0xa4   :  { %1007 = vmatpush1.bf16.msra.mxu0 %v3429_v34  ;;  %v3876_v34 = vld [vmem:[#allocation4 + $0xa4] ss:$16 sps:$4 sm:$0xff]  }
  0xa5   :  { %1008 = vmatprep.subr.bf16.mxu0 %v3438_v39  ;;  %1048 = vmatpush1.bf16.msra.mxu1 %v3431_v56  ;;  %v3865_v39 = vld [vmem:[#allocation4 + $0x68] ss:$16 sps:$4 sm:$0xff]   ;;  %v3897_v56 = vld [vmem:[#allocation4 + $0x10c] ss:$16 sps:$4 sm:$0xff]  }
  0xa6   :  { %1049 = vmatprep.subr.bf16.mxu1 %v3440_v61  ;;  %v3901_v61 = vld [vmem:[#allocation4 + $0x128] ss:$16 sps:$4 sm:$0xff]  }
  0xa8   :  { %1009 = vmatpush1.bf16.msra.mxu0 %v3437_v43  ;;  %v3888_v43 = vld [vmem:[#allocation4 + $0xe4] ss:$16 sps:$4 sm:$0xff]  }
  0xa9   :  { %1010 = vmatprep.subr.bf16.mxu0 %v3446_v47  ;;  %1050 = vmatpush1.bf16.msra.mxu1 %v3439_v63  ;;  %v3894_v47 = vld [vmem:[#allocation4 + $0x104] ss:$16 sps:$4 sm:$0xff]   ;;  %v3909_v63 = vld [vmem:[#allocation4 + $0x14c] ss:$16 sps:$4 sm:$0xff]  }
  0xaa   :  { %1051 = vmatprep.subr.bf16.mxu1 %v3448_v3  ;;  %v3915_v3 = vld [vmem:[#allocation4 + $0x16c] ss:$16 sps:$4 sm:$0xff]  }
  0xac   :  { %1011 = vmatpush1.bf16.msra.mxu0 %v3445_v51  ;;  %v3900_v51 = vld [vmem:[#allocation4 + $0x124] ss:$16 sps:$4 sm:$0xff]  }
  0xad   :  { %1012 = vmatprep.subr.bf16.mxu0 %v3454_v55  ;;  %1052 = vmatpush1.bf16.msra.mxu1 %v3447_v5  ;;  %v3906_v55 = vld [vmem:[#allocation4 + $0x144] ss:$16 sps:$4 sm:$0xff]  }
  0xae   :  { %1053 = vmatprep.subr.bf16.mxu1 %v3456_v10  ;;  %v3930_v5 = vld [vmem:[#allocation4 + $0x1c4] ss:$16 sps:$4 sm:$0xff]   ;;  %v3919_v10 = vld [vmem:[#allocation4 + $0x188] ss:$16 sps:$4 sm:$0xff]  }
  0xb0   :  { %1013 = vmatpush1.bf16.msra.mxu0 %v3453_v59  ;;  %v3912_v59 = vld [vmem:[#allocation4 + $0x164] ss:$16 sps:$4 sm:$0xff]  }
  0xb1   :  { %1014 = vmatprep.subr.bf16.mxu0 %v3462_v62  ;;  %1054 = vmatpush1.bf16.msra.mxu1 %v3455_v13  ;;  %v3918_v62 = vld [vmem:[#allocation4 + $0x184] ss:$16 sps:$4 sm:$0xff]   ;;  %v3934_v13 = vld [vmem:[#allocation4 + $0x1e0] ss:$16 sps:$4 sm:$0xff]  }
  0xb2   :  { %1055 = vmatprep.subr.bf16.mxu1 %v3464_v18  ;;  %v3931_v18 = vld [vmem:[#allocation4 + $0x1c8] ss:$16 sps:$4 sm:$0xff]  }
  0xb4   :  { %1015 = vmatpush1.bf16.msra.mxu0 %v3461_v2  ;;  %v3907_v2 = vld [vmem:[#allocation4 + $0x148] ss:$16 sps:$4 sm:$0xff]  }
  0xb5   :  { %1016 = vmatprep.subr.bf16.mxu0 %v3470_v4  ;;  %1056 = vmatpush1.bf16.msra.mxu1 %v3463_v20  ;;  %v3922_v4 = vld [vmem:[#allocation4 + $0x1a0] ss:$16 sps:$4 sm:$0xff]   ;;  %v3937_v20 = vld [vmem:[#allocation4 + $0x1e8] ss:$16 sps:$4 sm:$0xff]  }
  0xb6   :  { %1057 = vmatprep.subr.bf16.mxu1 %v3472_v22  ;;  %v201_v22 = vsub.s32 0, %v4420_v16 }
  0xb8   :  { %1017 = vmatpush1.bf16.msra.mxu0 %v3469_v9  ;;  %v3936_v9 = vld [vmem:[#allocation4 + $0x1e4] ss:$16 sps:$4 sm:$0xff]  }
  0xb9   :  { %2642 = vmatprep.subr.bf16.mxu0 %v3846_v8  ;;  %1058 = vmatpush1.bf16.msra.mxu1 %v3471_v24  ;;  %v3928_v8 = vld [vmem:[#allocation4 + $0x1c0] ss:$16 sps:$4 sm:$0xff]  }
  0xba   :  { %2806 = vmatprep.subr.bf16.mxu1 %v3849_v23  ;;  %v4451_v23 = vld [vmem:[%s4507_s2] sm:$0xff] }
  0xbb   :  { %1019 = vmatmul.mubr.bf16.vlgmr.msra.gmra.mrb[4].mxu0 %v4439_v11  ;;  %v202_v24 = vrot.slane %v4451_v23, %v201_v22 }
  0xbc   :  { %2643 = vmatpush1.bf16.msra.mxu0 %v3844_v12  ;;  %1060 = vmatmul.mubr.bf16.vlgmr.msra.gmra.mrb[4].mxu1 %v4439_v11  ;;  %v3880_v11 = vld [vmem:[#allocation4 + $0xc0] ss:$16 sps:$4 sm:$0xff]   ;;  %v3927_v12 = vld [vmem:[#allocation4 + $0x1ac] ss:$16 sps:$4 sm:$0xff]  }
  0xbd   :  { %2644 = vmatprep.subr.bf16.mxu0 %v3852_v17  ;;  %2807 = vmatpush1.bf16.msra.mxu1 %v3847_v27  ;;  %v3933_v17 = vld [vmem:[#allocation4 + $0x1cc] ss:$16 sps:$4 sm:$0xff]  }
  0xbe   :  { %2808 = vmatprep.subr.bf16.mxu1 %v3855_v28 }
  0xc0   :  { %2645 = vmatpush1.bf16.msra.mxu0 %v3850_v19  ;;  %v3939_v19 = vld [vmem:[#allocation4 + $0x1ec] ss:$16 sps:$4 sm:$0xff]  }
  0xc1   :  { %2646 = vmatprep.subr.bf16.mxu0 %v3858_v21  ;;  %2809 = vmatpush1.bf16.msra.mxu1 %v3853_v31  ;;  %v3945_v21 = vld [vmem:[#allocation4 + $0x20c] ss:$16 sps:$4 sm:$0xff]  }
  0xc2   :  { %2810 = vmatprep.subr.bf16.mxu1 %v3861_v32 }
  0xc4   :  { %2647 = vmatpush1.bf16.msra.mxu0 %v3856_v25  ;;  %v205_v25 = vsub.s32 1, %v4420_v16 }
  0xc5   :  { %2648 = vmatprep.subr.bf16.mxu0 %v3864_v26  ;;  %2811 = vmatpush1.bf16.msra.mxu1 %v3859_v35  ;;  %v213_v35 = vsub.s32 3, %v4420_v16 }
  0xc6   :  { %2812 = vmatprep.subr.bf16.mxu1 %v3867_v36  ;;  %v206_v26 = vrot.slane %v4451_v23, %v205_v25 }
  0xc8   :  { %2649 = vmatpush1.bf16.msra.mxu0 %v3862_v29 }
  0xc9   :  { %2650 = vmatprep.subr.bf16.mxu0 %v3870_v30  ;;  %2813 = vmatpush1.bf16.msra.mxu1 %v3865_v39  ;;  %v3943_v39 = vld [vmem:[#allocation4 + $0x208] ss:$16 sps:$4 sm:$0xff]  }
  0xca   :  { %2814 = vmatprep.subr.bf16.mxu1 %v3873_v41  ;;  %v3948_v41 = vld [vmem:[#allocation4 + $0x224] ss:$16 sps:$4 sm:$0xff]  }
  0xcc   :  { %2651 = vmatpush1.bf16.msra.mxu0 %v3868_v33 }
  0xcd   :  { %2652 = vmatprep.subr.bf16.mxu0 %v3876_v34  ;;  %2815 = vmatpush1.bf16.msra.mxu1 %v3871_v42  ;;  %v214_v42 = vrot.slane %v4451_v23, %v213_v35 }
  0xce   :  { %2816 = vmatprep.subr.bf16.mxu1 %v3879_v44  ;;  %v3949_v44 = vld [vmem:[#allocation4 + $0x228] ss:$16 sps:$4 sm:$0xff]  }
  0xd0   :  { %2653 = vmatpush1.bf16.msra.mxu0 %v3874_v37  ;;  %v3940_v37 = vld [vmem:[#allocation4 + $0x200] ss:$16 sps:$4 sm:$0xff]  }
  0xd1   :  { %2654 = vmatprep.subr.bf16.mxu0 %v3882_v40  ;;  %2817 = vmatpush1.bf16.msra.mxu1 %v3877_v46  ;;  %v3957_v46 = vld [vmem:[#allocation4 + $0x24c] ss:$16 sps:$4 sm:$0xff]  }
  0xd2   :  { %2818 = vmatprep.subr.bf16.mxu1 %v3885_v48 }
  0xd4   :  { %2655 = vmatpush1.bf16.msra.mxu0 %v3880_v11  ;;  %v3951_v11 = vld [vmem:[#allocation4 + $0x22c] ss:$16 sps:$4 sm:$0xff]  }
  0xd5   :  { %2656 = vmatprep.subr.bf16.mxu0 %v3888_v43  ;;  %2819 = vmatpush1.bf16.msra.mxu1 %v3883_v50  ;;  %v3946_v43 = vld [vmem:[#allocation4 + $0x220] ss:$16 sps:$4 sm:$0xff]  }
  0xd6   :  { %2820 = vmatprep.subr.bf16.mxu1 %v3891_v52  ;;  %v3955_v52 = vld [vmem:[#allocation4 + $0x248] ss:$16 sps:$4 sm:$0xff]  }
  0xd8   :  { %2657 = vmatpush1.bf16.msra.mxu0 %v3886_v45  ;;  %v3954_v45 = vld [vmem:[#allocation4 + $0x244] ss:$16 sps:$4 sm:$0xff]  }
  0xd9   :  { %2658 = vmatprep.subr.bf16.mxu0 %v3894_v47  ;;  %2821 = vmatpush1.bf16.msra.mxu1 %v3889_v54  ;;  %v3960_v54 = vld [vmem:[#allocation4 + $0x264] ss:$16 sps:$4 sm:$0xff]  }
  0xda   :  { %2822 = vmatprep.subr.bf16.mxu1 %v3897_v56 }
  0xdc   :  { %2659 = vmatpush1.bf16.msra.mxu0 %v3892_v49 }
  0xdd   :  { %2660 = vmatprep.subr.bf16.mxu0 %v3900_v51  ;;  %2823 = vmatpush1.bf16.msra.mxu1 %v3895_v58  ;;  %v3952_v51 = vld [vmem:[#allocation4 + $0x240] ss:$16 sps:$4 sm:$0xff]  }
  0xde   :  { %2824 = vmatprep.subr.bf16.mxu1 %v3903_v38  ;;  %v3958_v58 = vld [vmem:[#allocation4 + $0x260] ss:$16 sps:$4 sm:$0xff]   ;;  %v3966_v38 = vld [vmem:[#allocation4 + $0x284] ss:$16 sps:$4 sm:$0xff]  }
  0xe0   :  { %2661 = vmatpush1.bf16.msra.mxu0 %v3898_v53 }
  0xe1   :  { %2662 = vmatprep.subr.bf16.mxu0 %v3906_v55  ;;  %2825 = vmatpush1.bf16.msra.mxu1 %v3901_v61  ;;  %v3963_v55 = vld [vmem:[#allocation4 + $0x26c] ss:$16 sps:$4 sm:$0xff]   ;;  %v3964_v61 = vld [vmem:[#allocation4 + $0x280] ss:$16 sps:$4 sm:$0xff]  }
  0xe2   :  { %2826 = vmatprep.subr.bf16.mxu1 %v3909_v63  ;;  %v3972_v63 = vld [vmem:[#allocation4 + $0x2a4] ss:$16 sps:$4 sm:$0xff]  }
  0xe4   :  { %2663 = vmatpush1.bf16.msra.mxu0 %v3904_v57 }
  0xe5   :  { %2664 = vmatprep.subr.bf16.mxu0 %v3912_v59  ;;  %2827 = vmatpush1.bf16.msra.mxu1 %v3907_v2  ;;  %v3961_v59 = vld [vmem:[#allocation4 + $0x268] ss:$16 sps:$4 sm:$0xff]  }
  0xe6   :  { %2828 = vmatprep.subr.bf16.mxu1 %v3915_v3  ;;  %v3973_v2 = vld [vmem:[#allocation4 + $0x2a8] ss:$16 sps:$4 sm:$0xff]   ;;  %v3978_v3 = vld [vmem:[#allocation4 + $0x2c4] ss:$16 sps:$4 sm:$0xff]  }
  0xe8   :  { %2665 = vmatpush1.bf16.msra.mxu0 %v3910_v60  ;;  %v3969_v60 = vld [vmem:[#allocation4 + $0x28c] ss:$16 sps:$4 sm:$0xff]  }
  0xe9   :  { %2666 = vmatprep.subr.bf16.mxu0 %v3918_v62  ;;  %2829 = vmatpush1.bf16.msra.mxu1 %v3913_v6  ;;  %v3967_v62 = vld [vmem:[#allocation4 + $0x288] ss:$16 sps:$4 sm:$0xff]  }
  0xea   :  { %2830 = vmatprep.subr.bf16.mxu1 %v3921_v7  ;;  %v3979_v6 = vld [vmem:[#allocation4 + $0x2c8] ss:$16 sps:$4 sm:$0xff]   ;;  %v3984_v7 = vld [vmem:[#allocation4 + $0x2e4] ss:$16 sps:$4 sm:$0xff]  }
  0xec   :  { %2667 = vmatpush1.bf16.msra.mxu0 %v3916_v0  ;;  %v3975_v0 = vld [vmem:[#allocation4 + $0x2ac] ss:$16 sps:$4 sm:$0xff]  }
  0xed   :  { %2668 = vmatprep.subr.bf16.mxu0 %v3924_v1  ;;  %2831 = vmatpush1.bf16.msra.mxu1 %v3919_v10  ;;  %v3970_v1 = vld [vmem:[#allocation4 + $0x2a0] ss:$16 sps:$4 sm:$0xff]   ;;  %v3985_v10 = vld [vmem:[#allocation4 + $0x2e8] ss:$16 sps:$4 sm:$0xff]  }
  0xee   :  { %2832 = vmatprep.subr.bf16.mxu1 %v3927_v12  ;;  %v3990_v12 = vld [vmem:[#allocation4 + $0x304] ss:$16 sps:$4 sm:$0xff]  }
  0xf0   :  { %2669 = vmatpush1.bf16.msra.mxu0 %v3922_v4  ;;  %v3981_v4 = vld [vmem:[#allocation4 + $0x2cc] ss:$16 sps:$4 sm:$0xff]  }
  0xf1   :  { %2670 = vmatprep.subr.bf16.mxu0 %v3930_v5  ;;  %2833 = vmatpush1.bf16.msra.mxu1 %v3925_v15  ;;  %v3976_v5 = vld [vmem:[#allocation4 + $0x2c0] ss:$16 sps:$4 sm:$0xff]   ;;  %v3991_v15 = vld [vmem:[#allocation4 + $0x308] ss:$16 sps:$4 sm:$0xff]  }
  0xf2   :  { %2834 = vmatprep.subr.bf16.mxu1 %v3933_v17  ;;  %v3996_v17 = vld [vmem:[#allocation4 + $0x324] ss:$16 sps:$4 sm:$0xff]  }
  0xf4   :  { %2671 = vmatpush1.bf16.msra.mxu0 %v3928_v8  ;;  %v3987_v8 = vld [vmem:[#allocation4 + $0x2ec] ss:$16 sps:$4 sm:$0xff]  }
  0xf5   :  { %2672 = vmatprep.subr.bf16.mxu0 %v3936_v9  ;;  %2835 = vmatpush1.bf16.msra.mxu1 %v3931_v18  ;;  %v3982_v9 = vld [vmem:[#allocation4 + $0x2e0] ss:$16 sps:$4 sm:$0xff]   ;;  %v3999_v18 = vld [vmem:[#allocation4 + $0x32c] ss:$16 sps:$4 sm:$0xff]  }
  0xf6   :  { %2836 = vmatprep.subr.bf16.mxu1 %v3939_v19  ;;  %v3994_v19 = vld [vmem:[#allocation4 + $0x320] ss:$16 sps:$4 sm:$0xff]  }
  0xf8   :  { %2673 = vmatpush1.bf16.msra.mxu0 %v3934_v13  ;;  %v3993_v13 = vld [vmem:[#allocation4 + $0x30c] ss:$16 sps:$4 sm:$0xff]  }
  0xf9   :  { %2683 = vmatprep.subr.bf16.mxu0 %v3942_v14  ;;  %2837 = vmatpush1.bf16.msra.mxu1 %v3937_v20  ;;  %v3988_v14 = vld [vmem:[#allocation4 + $0x300] ss:$16 sps:$4 sm:$0xff]   ;;  %v3997_v20 = vld [vmem:[#allocation4 + $0x328] ss:$16 sps:$4 sm:$0xff]  }
  0xfa   :  { %2847 = vmatprep.subr.bf16.mxu1 %v3945_v21  ;;  %v4002_v21 = vld [vmem:[#allocation4 + $0x344] ss:$16 sps:$4 sm:$0xff]  }
 0x14e   :  { %v938_v27 = vpop.f32.mrb[0].mxu0  ;;  %v4464_v47 = vpop.f32.mrb[0].mxu1 }
 0x14f   :  { %v939_v28 = vadd.f32 %v938_v27, %v202_v24  ;;  %v940_v29 = vpop.f32.mrb[1].mxu0  ;;  %v981_v48 = vpop.f32.mrb[1].mxu1  ;;  %v4005_v24 = vld [vmem:[#allocation4 + $0x34c] ss:$16 sps:$4 sm:$0xff]   ;;  %v4003_v27 = vld [vmem:[#allocation4 + $0x348] ss:$16 sps:$4 sm:$0xff]  }
 0x150   :  { %v941_v30 = vadd.f32 %v940_v29, %v206_v26  ;;  %v942_v31 = vpop.f32.mrb[2].mxu0  ;;  %v982_v49 = vadd.f32 %v981_v48, %v214_v42  ;;  %v983_v50 = vpop.f32.mrb[2].mxu1  ;;  %v4000_v26 = vld [vmem:[#allocation4 + $0x340] ss:$16 sps:$4 sm:$0xff]   ;;  %v4011_v29 = vld [vmem:[#allocation4 + $0x36c] ss:$16 sps:$4 sm:$0xff]  }
 0x151   :  { %v1068_v32 = vmax.f32 %v939_v28, 0.0  ;;  %v943_v33 = vpop.f32.mrb[3].mxu0  ;;  %v984_v53 = vpop.f32.mrb[3].mxu1  ;;  %v4008_v28 = vld [vmem:[#allocation4 + $0x364] ss:$16 sps:$4 sm:$0xff]  }
 0x152   :  { %v1069_v34 = vmax.f32 %v941_v30, 0.0  ;;  %v1071_v56 = vmax.f32 %v982_v49, 0.0  ;;  %v4006_v30 = vld [vmem:[#allocation4 + $0x360] ss:$16 sps:$4 sm:$0xff]   ;;  %v4009_v31 = vld [vmem:[#allocation4 + $0x368] ss:$16 sps:$4 sm:$0xff]  }
 0x153   :  { %v1076_v40 = vpack.c.bf16 %v1068_v32, %v1068_v32  ;;  %v4014_v32 = vld [vmem:[#allocation4 + $0x384] ss:$16 sps:$4 sm:$0xff]   ;;  %v4017_v33 = vld [vmem:[#allocation4 + $0x38c] ss:$16 sps:$4 sm:$0xff]   ;;  %v4021_v42 = vld [vmem:[#allocation4 + $0x3a8] ss:$16 sps:$4 sm:$0xff]  }
 0x154   :  { %v1077_v36 = vpack.c.bf16 %v1069_v34, %v1069_v34  ;;  %v1079_v57 = vpack.c.bf16 %v1071_v56, %v1071_v56  ;;  %v209_v34 = vsub.s32 2, %v4420_v16  ;;  %v4024_v48 = vld [vmem:[#allocation4 + $0x3c0] ss:$16 sps:$4 sm:$0xff]   ;;  %v4027_v49 = vld [vmem:[#allocation4 + $0x3c8] ss:$16 sps:$4 sm:$0xff]  }
 0x155   :  { %v4030_v56 = vld [vmem:[#allocation4 + $0x3e0] ss:$16 sps:$4 sm:$0xff]  }
 0x156   :  { %2674 = vmatprep.mubr.bf16.mxu0 %v1077_v36  ;;  %2838 = vmatprep.mubr.bf16.mxu1 %v1077_v36  ;;  %v4012_v36 = vld [vmem:[#allocation4 + $0x380] ss:$16 sps:$4 sm:$0xff]  }
 0x157   :  { %2675 = vmatmul.mubr.bf16.vlgmr.msra.gmra.mrb[8].mxu0 %v1076_v40  ;;  %2839 = vmatmul.mubr.bf16.vlgmr.msra.gmra.mrb[8].mxu1 %v1076_v40  ;;  %v4023_v40 = vld [vmem:[#allocation4 + $0x3ac] ss:$16 sps:$4 sm:$0xff]  }
 0x158   :  { %2684 = vmatpush1.bf16.msra.mxu0 %v3940_v37  ;;  %2848 = vmatpush1.bf16.msra.mxu1 %v3943_v39  ;;  %v4015_v37 = vld [vmem:[#allocation4 + $0x388] ss:$16 sps:$4 sm:$0xff]   ;;  %v4020_v39 = vld [vmem:[#allocation4 + $0x3a4] ss:$16 sps:$4 sm:$0xff]  }
 0x159   :  { %2685 = vmatprep.subr.bf16.mxu0 %v3948_v41  ;;  %2849 = vmatprep.subr.bf16.mxu1 %v3951_v11  ;;  %v210_v41 = vrot.slane %v4451_v23, %v209_v34  ;;  %v4018_v11 = vld [vmem:[#allocation4 + $0x3a0] ss:$16 sps:$4 sm:$0xff]  }
 0x15a   :  { %2715 = vmatprep.mubr.bf16.mxu0 %v1079_v57  ;;  %2879 = vmatprep.mubr.bf16.mxu1 %v1079_v57  ;;  %v4033_v57 = vld [vmem:[#allocation4 + $0x3e8] ss:$16 sps:$4 sm:$0xff]  }
 0x15c   :  { %2686 = vmatpush1.bf16.msra.mxu0 %v3946_v43  ;;  %2850 = vmatpush1.bf16.msra.mxu1 %v3949_v44  ;;  %v221_v43 = vsub.s32 5, %v4420_v16  ;;  %v4026_v44 = vld [vmem:[#allocation4 + $0x3c4] ss:$16 sps:$4 sm:$0xff]  }
 0x15d   :  { %2687 = vmatprep.subr.bf16.mxu0 %v3954_v45  ;;  %2851 = vmatprep.subr.bf16.mxu1 %v3957_v46  ;;  %v4029_v45 = vld [vmem:[#allocation4 + $0x3cc] ss:$16 sps:$4 sm:$0xff]   ;;  %v980_v46 = vadd.f32 %v4464_v47, %v210_v41  ;;  %v4081_v41 = vld [vmem:[#allocation4 + $0x4e8] ss:$16 sps:$4 sm:$0xff]  }
 0x15e   :  { %v222_v50 = vrot.slane %v4451_v23, %v221_v43  ;;  %v4084_v43 = vld [vmem:[#allocation4 + $0x500] ss:$16 sps:$4 sm:$0xff]  }
 0x160   :  { %2688 = vmatpush1.bf16.msra.mxu0 %v3952_v51  ;;  %2852 = vmatpush1.bf16.msra.mxu1 %v3955_v52  ;;  %v4032_v51 = vld [vmem:[#allocation4 + $0x3e4] ss:$16 sps:$4 sm:$0xff]   ;;  %v4035_v52 = vld [vmem:[#allocation4 + $0x3ec] ss:$16 sps:$4 sm:$0xff]  }
 0x161   :  { %2689 = vmatprep.subr.bf16.mxu0 %v3960_v54  ;;  %2853 = vmatprep.subr.bf16.mxu1 %v3963_v55  ;;  %v1070_v54 = vmax.f32 %v980_v46, 0.0  ;;  %v4095_v46 = vld [vmem:[#allocation4 + $0x52c] ss:$16 sps:$4 sm:$0xff]  }
 0x164   :  { %2690 = vmatpush1.bf16.msra.mxu0 %v3958_v58  ;;  %2854 = vmatpush1.bf16.msra.mxu1 %v3961_v59  ;;  %v4038_v59 = vld [vmem:[#allocation4 + $0x404] ss:$16 sps:$4 sm:$0xff]  }
 0x165   :  { %2691 = vmatprep.subr.bf16.mxu0 %v3966_v38  ;;  %2855 = vmatprep.subr.bf16.mxu1 %v3969_v60  ;;  %v4041_v38 = vld [vmem:[#allocation4 + $0x40c] ss:$16 sps:$4 sm:$0xff]  }
 0x168   :  { %2692 = vmatpush1.bf16.msra.mxu0 %v3964_v61  ;;  %2856 = vmatpush1.bf16.msra.mxu1 %v3967_v62  ;;  %v1078_v62 = vpack.c.bf16 %v1070_v54, %v1070_v54  ;;  %v4099_v54 = vld [vmem:[#allocation4 + $0x548] ss:$16 sps:$4 sm:$0xff]  }
 0x169   :  { %2693 = vmatprep.subr.bf16.mxu0 %v3972_v63  ;;  %2857 = vmatprep.subr.bf16.mxu1 %v3975_v0  ;;  %v4036_v63 = vld [vmem:[#allocation4 + $0x400] ss:$16 sps:$4 sm:$0xff]   ;;  %v4039_v0 = vld [vmem:[#allocation4 + $0x408] ss:$16 sps:$4 sm:$0xff]  }
 0x16c   :  { %2694 = vmatpush1.bf16.msra.mxu0 %v3970_v1  ;;  %2858 = vmatpush1.bf16.msra.mxu1 %v3973_v2  ;;  %v4044_v1 = vld [vmem:[#allocation4 + $0x424] ss:$16 sps:$4 sm:$0xff]   ;;  %v4047_v2 = vld [vmem:[#allocation4 + $0x42c] ss:$16 sps:$4 sm:$0xff]  }
 0x16d   :  { %2695 = vmatprep.subr.bf16.mxu0 %v3978_v3  ;;  %2859 = vmatprep.subr.bf16.mxu1 %v3981_v4  ;;  %v4042_v4 = vld [vmem:[#allocation4 + $0x420] ss:$16 sps:$4 sm:$0xff]  }
 0x170   :  { %2696 = vmatpush1.bf16.msra.mxu0 %v3976_v5  ;;  %2860 = vmatpush1.bf16.msra.mxu1 %v3979_v6  ;;  %v4045_v5 = vld [vmem:[#allocation4 + $0x428] ss:$16 sps:$4 sm:$0xff]   ;;  %v4050_v6 = vld [vmem:[#allocation4 + $0x444] ss:$16 sps:$4 sm:$0xff]  }
 0x171   :  { %2697 = vmatprep.subr.bf16.mxu0 %v3984_v7  ;;  %2861 = vmatprep.subr.bf16.mxu1 %v3987_v8  ;;  %v4053_v7 = vld [vmem:[#allocation4 + $0x44c] ss:$16 sps:$4 sm:$0xff]  }
 0x174   :  { %2698 = vmatpush1.bf16.msra.mxu0 %v3982_v9  ;;  %2862 = vmatpush1.bf16.msra.mxu1 %v3985_v10 }
 0x175   :  { %2699 = vmatprep.subr.bf16.mxu0 %v3990_v12  ;;  %2863 = vmatprep.subr.bf16.mxu1 %v3993_v13  ;;  %v4048_v12 = vld [vmem:[#allocation4 + $0x440] ss:$16 sps:$4 sm:$0xff]   ;;  %v4051_v13 = vld [vmem:[#allocation4 + $0x448] ss:$16 sps:$4 sm:$0xff]  }
 0x178   :  { %2700 = vmatpush1.bf16.msra.mxu0 %v3988_v14  ;;  %2864 = vmatpush1.bf16.msra.mxu1 %v3991_v15  ;;  %v4056_v15 = vld [vmem:[#allocation4 + $0x464] ss:$16 sps:$4 sm:$0xff]  }
 0x179   :  { %2701 = vmatprep.subr.bf16.mxu0 %v3996_v17  ;;  %2865 = vmatprep.subr.bf16.mxu1 %v3999_v18  ;;  %v4059_v17 = vld [vmem:[#allocation4 + $0x46c] ss:$16 sps:$4 sm:$0xff]   ;;  %v4054_v18 = vld [vmem:[#allocation4 + $0x460] ss:$16 sps:$4 sm:$0xff]  }
 0x17c   :  { %2702 = vmatpush1.bf16.msra.mxu0 %v3994_v19  ;;  %2866 = vmatpush1.bf16.msra.mxu1 %v3997_v20  ;;  %v4057_v19 = vld [vmem:[#allocation4 + $0x468] ss:$16 sps:$4 sm:$0xff]   ;;  %v4062_v20 = vld [vmem:[#allocation4 + $0x484] ss:$16 sps:$4 sm:$0xff]  }
 0x17d   :  { %2703 = vmatprep.subr.bf16.mxu0 %v4002_v21  ;;  %2867 = vmatprep.subr.bf16.mxu1 %v4005_v24  ;;  %v4065_v21 = vld [vmem:[#allocation4 + $0x48c] ss:$16 sps:$4 sm:$0xff]   ;;  %v4060_v24 = vld [vmem:[#allocation4 + $0x480] ss:$16 sps:$4 sm:$0xff]  }
 0x180   :  { %2704 = vmatpush1.bf16.msra.mxu0 %v4000_v26  ;;  %2868 = vmatpush1.bf16.msra.mxu1 %v4003_v27  ;;  %v4063_v26 = vld [vmem:[#allocation4 + $0x488] ss:$16 sps:$4 sm:$0xff]   ;;  %v4068_v27 = vld [vmem:[#allocation4 + $0x4a4] ss:$16 sps:$4 sm:$0xff]  }
 0x181   :  { %2705 = vmatprep.subr.bf16.mxu0 %v4008_v28  ;;  %2869 = vmatprep.subr.bf16.mxu1 %v4011_v29  ;;  %v4071_v28 = vld [vmem:[#allocation4 + $0x4ac] ss:$16 sps:$4 sm:$0xff]   ;;  %v4066_v29 = vld [vmem:[#allocation4 + $0x4a0] ss:$16 sps:$4 sm:$0xff]  }
 0x184   :  { %2706 = vmatpush1.bf16.msra.mxu0 %v4006_v30  ;;  %2870 = vmatpush1.bf16.msra.mxu1 %v4009_v31  ;;  %v4069_v30 = vld [vmem:[#allocation4 + $0x4a8] ss:$16 sps:$4 sm:$0xff]   ;;  %v4074_v31 = vld [vmem:[#allocation4 + $0x4c4] ss:$16 sps:$4 sm:$0xff]  }
 0x185   :  { %2707 = vmatprep.subr.bf16.mxu0 %v4014_v32  ;;  %2871 = vmatprep.subr.bf16.mxu1 %v4017_v33  ;;  %v4077_v32 = vld [vmem:[#allocation4 + $0x4cc] ss:$16 sps:$4 sm:$0xff]   ;;  %v4072_v33 = vld [vmem:[#allocation4 + $0x4c0] ss:$16 sps:$4 sm:$0xff]  }
 0x188   :  { %2708 = vmatpush1.bf16.msra.mxu0 %v4012_v36  ;;  %2872 = vmatpush1.bf16.msra.mxu1 %v4015_v37  ;;  %v4075_v36 = vld [vmem:[#allocation4 + $0x4c8] ss:$16 sps:$4 sm:$0xff]   ;;  %v4080_v37 = vld [vmem:[#allocation4 + $0x4e4] ss:$16 sps:$4 sm:$0xff]  }
 0x189   :  { %2709 = vmatprep.subr.bf16.mxu0 %v4020_v39  ;;  %2873 = vmatprep.subr.bf16.mxu1 %v4023_v40  ;;  %v4083_v39 = vld [vmem:[#allocation4 + $0x4ec] ss:$16 sps:$4 sm:$0xff]   ;;  %v4078_v40 = vld [vmem:[#allocation4 + $0x4e0] ss:$16 sps:$4 sm:$0xff]  }
 0x18c   :  { %2710 = vmatpush1.bf16.msra.mxu0 %v4018_v11  ;;  %2874 = vmatpush1.bf16.msra.mxu1 %v4021_v42  ;;  %v4086_v11 = vld [vmem:[#allocation4 + $0x504] ss:$16 sps:$4 sm:$0xff]   ;;  %v4089_v42 = vld [vmem:[#allocation4 + $0x50c] ss:$16 sps:$4 sm:$0xff]  }
 0x18d   :  { %2711 = vmatprep.subr.bf16.mxu0 %v4026_v44  ;;  %2875 = vmatprep.subr.bf16.mxu1 %v4029_v45  ;;  %v4087_v44 = vld [vmem:[#allocation4 + $0x508] ss:$16 sps:$4 sm:$0xff]   ;;  %v4092_v45 = vld [vmem:[#allocation4 + $0x524] ss:$16 sps:$4 sm:$0xff]  }
 0x18e   :  { %v4473_v53 = vpop.f32.mrb[4].mxu0 }
 0x18f   :  { %v1022_v55 = vpop.f32.mrb[5].mxu0  ;;  %v4475_v8 = vpop.f32.mrb[4].mxu1 }
 0x190   :  { %2712 = vmatpush1.bf16.msra.mxu0 %v4024_v48  ;;  %2876 = vmatpush1.bf16.msra.mxu1 %v4027_v49  ;;  %v1023_v58 = vadd.f32 %v1022_v55, %v222_v50  ;;  %v1024_v47 = vpop.f32.mrb[6].mxu0  ;;  %v4477_v9 = vpop.f32.mrb[5].mxu1  ;;  %v4090_v48 = vld [vmem:[#allocation4 + $0x520] ss:$16 sps:$4 sm:$0xff]   ;;  %v4093_v49 = vld [vmem:[#allocation4 + $0x528] ss:$16 sps:$4 sm:$0xff]  }
 0x191   :  { %2713 = vmatprep.subr.bf16.mxu0 %v4032_v51  ;;  %2877 = vmatprep.subr.bf16.mxu1 %v4035_v52  ;;  %v1025_v60 = vpop.f32.mrb[7].mxu0  ;;  %v1065_v10 = vpop.f32.mrb[6].mxu1  ;;  %v4098_v50 = vld [vmem:[#allocation4 + $0x544] ss:$16 sps:$4 sm:$0xff]   ;;  %v4101_v51 = vld [vmem:[#allocation4 + $0x54c] ss:$16 sps:$4 sm:$0xff]  }
 0x192   :  { %v1073_v61 = vmax.f32 %v1023_v58, 0.0  ;;  %v1066_v14 = vpop.f32.mrb[7].mxu1  ;;  %v4096_v52 = vld [vmem:[#allocation4 + $0x540] ss:$16 sps:$4 sm:$0xff]   ;;  %v4104_v55 = vld [vmem:[#allocation4 + $0x564] ss:$16 sps:$4 sm:$0xff]  }
 0x193   :  { %v4105_v58 = vld [vmem:[#allocation4 + $0x568] ss:$16 sps:$4 sm:$0xff]   ;;  %v4110_v47 = vld [vmem:[#allocation4 + $0x584] ss:$16 sps:$4 sm:$0xff]   ;;  %v4108_v60 = vld [vmem:[#allocation4 + $0x580] ss:$16 sps:$4 sm:$0xff]  }
 0x194   :  { %2714 = vmatpush1.bf16.msra.mxu0 %v4030_v56  ;;  %2878 = vmatpush1.bf16.msra.mxu1 %v4033_v57  ;;  %v1081_v3 = vpack.c.bf16 %v1073_v61, %v1073_v61  ;;  %v4107_v56 = vld [vmem:[#allocation4 + $0x56c] ss:$16 sps:$4 sm:$0xff]   ;;  %v4102_v57 = vld [vmem:[#allocation4 + $0x560] ss:$16 sps:$4 sm:$0xff]   ;;  %v4111_v61 = vld [vmem:[#allocation4 + $0x588] ss:$16 sps:$4 sm:$0xff]  }
 0x195   :  { %2724 = vmatprep.subr.bf16.mxu0 %v4038_v59  ;;  %2888 = vmatprep.subr.bf16.mxu1 %v4041_v38  ;;  %v4113_v59 = vld [vmem:[#allocation4 + $0x58c] ss:$16 sps:$4 sm:$0xff]   ;;  %v217_v38 = vsub.s32 4, %v4420_v16  ;;  %v4120_v10 = vld [vmem:[#allocation4 + $0x5c0] ss:$16 sps:$4 sm:$0xff]  }
 0x196   :  { %v4131_v14 = vld [vmem:[#allocation4 + $0x5ec] ss:$16 sps:$4 sm:$0xff]  }
 0x197   :  { %2716 = vmatmul.mubr.bf16.vlgmr.msra.gmra.mrb[8].mxu0 %v1078_v62  ;;  %2880 = vmatmul.mubr.bf16.vlgmr.msra.gmra.mrb[8].mxu1 %v1078_v62  ;;  %v4116_v62 = vld [vmem:[#allocation4 + $0x5a4] ss:$16 sps:$4 sm:$0xff]  }
 0x198   :  { %2725 = vmatpush1.bf16.msra.mxu0 %v4036_v63  ;;  %2889 = vmatpush1.bf16.msra.mxu1 %v4039_v0  ;;  %v4119_v63 = vld [vmem:[#allocation4 + $0x5ac] ss:$16 sps:$4 sm:$0xff]   ;;  %v229_v0 = vsub.s32 7, %v4420_v16 }
 0x199   :  { %2726 = vmatprep.subr.bf16.mxu0 %v4044_v1  ;;  %2890 = vmatprep.subr.bf16.mxu1 %v4047_v2  ;;  %v218_v1 = vrot.slane %v4451_v23, %v217_v38  ;;  %v4114_v2 = vld [vmem:[#allocation4 + $0x5a0] ss:$16 sps:$4 sm:$0xff]   ;;  %v4185_v38 = vld [vmem:[#allocation4 + $0x70c] ss:$16 sps:$4 sm:$0xff]  }
 0x19a   :  { %2756 = vmatprep.mubr.bf16.mxu0 %v1081_v3  ;;  %2920 = vmatprep.mubr.bf16.mxu1 %v1081_v3  ;;  %v4117_v3 = vld [vmem:[#allocation4 + $0x5a8] ss:$16 sps:$4 sm:$0xff]  }
 0x19c   :  { %2727 = vmatpush1.bf16.msra.mxu0 %v4042_v4  ;;  %2891 = vmatpush1.bf16.msra.mxu1 %v4045_v5  ;;  %v4122_v4 = vld [vmem:[#allocation4 + $0x5c4] ss:$16 sps:$4 sm:$0xff]   ;;  %v4125_v5 = vld [vmem:[#allocation4 + $0x5cc] ss:$16 sps:$4 sm:$0xff]  }
 0x19d   :  { %2728 = vmatprep.subr.bf16.mxu0 %v4050_v6  ;;  %2892 = vmatprep.subr.bf16.mxu1 %v4053_v7  ;;  %v230_v6 = vrot.slane %v4451_v23, %v229_v0  ;;  %v1021_v7 = vadd.f32 %v4473_v53, %v218_v1  ;;  %v4186_v0 = vld [vmem:[#allocation4 + $0x720] ss:$16 sps:$4 sm:$0xff]   ;;  %v4189_v1 = vld [vmem:[#allocation4 + $0x728] ss:$16 sps:$4 sm:$0xff]  }
 0x1a0   :  { %2729 = vmatpush1.bf16.msra.mxu0 %v4048_v12  ;;  %2893 = vmatpush1.bf16.msra.mxu1 %v4051_v13  ;;  %v4123_v12 = vld [vmem:[#allocation4 + $0x5c8] ss:$16 sps:$4 sm:$0xff]   ;;  %v4128_v13 = vld [vmem:[#allocation4 + $0x5e4] ss:$16 sps:$4 sm:$0xff]  }
 0x1a1   :  { %2730 = vmatprep.subr.bf16.mxu0 %v4056_v15  ;;  %2894 = vmatprep.subr.bf16.mxu1 %v4059_v17  ;;  %v1064_v15 = vadd.f32 %v4477_v9, %v230_v6  ;;  %v1072_v17 = vmax.f32 %v1021_v7, 0.0  ;;  %v4200_v6 = vld [vmem:[#allocation4 + $0x764] ss:$16 sps:$4 sm:$0xff]   ;;  %v4203_v7 = vld [vmem:[#allocation4 + $0x76c] ss:$16 sps:$4 sm:$0xff]  }
 0x1a3   :  { %v1075_v53 = vmax.f32 %v1064_v15, 0.0  ;;  %v4204_v15 = vld [vmem:[#allocation4 + $0x780] ss:$16 sps:$4 sm:$0xff]  }
 0x1a4   :  { %2731 = vmatpush1.bf16.msra.mxu0 %v4054_v18  ;;  %2895 = vmatpush1.bf16.msra.mxu1 %v4057_v19  ;;  %v4126_v18 = vld [vmem:[#allocation4 + $0x5e0] ss:$16 sps:$4 sm:$0xff]   ;;  %v4129_v19 = vld [vmem:[#allocation4 + $0x5e8] ss:$16 sps:$4 sm:$0xff]  }
 0x1a5   :  { %2732 = vmatprep.subr.bf16.mxu0 %v4062_v20  ;;  %2896 = vmatprep.subr.bf16.mxu1 %v4065_v21  ;;  %v4134_v20 = vld [vmem:[#allocation4 + $0x604] ss:$16 sps:$4 sm:$0xff]   ;;  %v4137_v21 = vld [vmem:[#allocation4 + $0x60c] ss:$16 sps:$4 sm:$0xff]   ;;  %v1083_v9 = vpack.c.bf16 %v1075_v53, %v1075_v53  ;;  %v4213_v53 = vld [vmem:[#allocation4 + $0x7a8] ss:$16 sps:$4 sm:$0xff]  }
 0x1a8   :  { %2733 = vmatpush1.bf16.msra.mxu0 %v4060_v24  ;;  %2897 = vmatpush1.bf16.msra.mxu1 %v4063_v26  ;;  %v1080_v24 = vpack.c.bf16 %v1072_v17, %v1072_v17  ;;  %v4132_v26 = vld [vmem:[#allocation4 + $0x600] ss:$16 sps:$4 sm:$0xff]   ;;  %v4207_v17 = vld [vmem:[#allocation4 + $0x788] ss:$16 sps:$4 sm:$0xff]  }
 0x1a9   :  { %2734 = vmatprep.subr.bf16.mxu0 %v4068_v27  ;;  %2898 = vmatprep.subr.bf16.mxu1 %v4071_v28  ;;  %v4135_v27 = vld [vmem:[#allocation4 + $0x608] ss:$16 sps:$4 sm:$0xff]   ;;  %v4140_v28 = vld [vmem:[#allocation4 + $0x624] ss:$16 sps:$4 sm:$0xff]  }
 0x1ac   :  { %2735 = vmatpush1.bf16.msra.mxu0 %v4066_v29  ;;  %2899 = vmatpush1.bf16.msra.mxu1 %v4069_v30  ;;  %v4143_v29 = vld [vmem:[#allocation4 + $0x62c] ss:$16 sps:$4 sm:$0xff]   ;;  %v4138_v30 = vld [vmem:[#allocation4 + $0x620] ss:$16 sps:$4 sm:$0xff]  }
 0x1ad   :  { %2736 = vmatprep.subr.bf16.mxu0 %v4074_v31  ;;  %2900 = vmatprep.subr.bf16.mxu1 %v4077_v32  ;;  %v4141_v31 = vld [vmem:[#allocation4 + $0x628] ss:$16 sps:$4 sm:$0xff]   ;;  %v4146_v32 = vld [vmem:[#allocation4 + $0x644] ss:$16 sps:$4 sm:$0xff]  }
 0x1b0   :  { %2737 = vmatpush1.bf16.msra.mxu0 %v4072_v33  ;;  %2901 = vmatpush1.bf16.msra.mxu1 %v4075_v36  ;;  %v4149_v33 = vld [vmem:[#allocation4 + $0x64c] ss:$16 sps:$4 sm:$0xff]   ;;  %v4144_v36 = vld [vmem:[#allocation4 + $0x640] ss:$16 sps:$4 sm:$0xff]  }
 0x1b1   :  { %2738 = vmatprep.subr.bf16.mxu0 %v4080_v37  ;;  %2902 = vmatprep.subr.bf16.mxu1 %v4083_v39  ;;  %v4147_v37 = vld [vmem:[#allocation4 + $0x648] ss:$16 sps:$4 sm:$0xff]   ;;  %v4152_v39 = vld [vmem:[#allocation4 + $0x664] ss:$16 sps:$4 sm:$0xff]  }
 0x1b4   :  { %2739 = vmatpush1.bf16.msra.mxu0 %v4078_v40  ;;  %2903 = vmatpush1.bf16.msra.mxu1 %v4081_v41  ;;  %v4155_v40 = vld [vmem:[#allocation4 + $0x66c] ss:$16 sps:$4 sm:$0xff]   ;;  %v4150_v41 = vld [vmem:[#allocation4 + $0x660] ss:$16 sps:$4 sm:$0xff]  }
 0x1b5   :  { %2740 = vmatprep.subr.bf16.mxu0 %v4086_v11  ;;  %2904 = vmatprep.subr.bf16.mxu1 %v4089_v42  ;;  %v4153_v11 = vld [vmem:[#allocation4 + $0x668] ss:$16 sps:$4 sm:$0xff]   ;;  %v4158_v42 = vld [vmem:[#allocation4 + $0x684] ss:$16 sps:$4 sm:$0xff]  }
 0x1b8   :  { %2741 = vmatpush1.bf16.msra.mxu0 %v4084_v43  ;;  %2905 = vmatpush1.bf16.msra.mxu1 %v4087_v44  ;;  %v4161_v43 = vld [vmem:[#allocation4 + $0x68c] ss:$16 sps:$4 sm:$0xff]   ;;  %v4156_v44 = vld [vmem:[#allocation4 + $0x680] ss:$16 sps:$4 sm:$0xff]  }
 0x1b9   :  { %2742 = vmatprep.subr.bf16.mxu0 %v4092_v45  ;;  %2906 = vmatprep.subr.bf16.mxu1 %v4095_v46  ;;  %v4159_v45 = vld [vmem:[#allocation4 + $0x688] ss:$16 sps:$4 sm:$0xff]   ;;  %v4164_v46 = vld [vmem:[#allocation4 + $0x6a4] ss:$16 sps:$4 sm:$0xff]  }
 0x1bc   :  { %2743 = vmatpush1.bf16.msra.mxu0 %v4090_v48  ;;  %2907 = vmatpush1.bf16.msra.mxu1 %v4093_v49  ;;  %v4167_v48 = vld [vmem:[#allocation4 + $0x6ac] ss:$16 sps:$4 sm:$0xff]   ;;  %v4162_v49 = vld [vmem:[#allocation4 + $0x6a0] ss:$16 sps:$4 sm:$0xff]  }
 0x1bd   :  { %2744 = vmatprep.subr.bf16.mxu0 %v4098_v50  ;;  %2908 = vmatprep.subr.bf16.mxu1 %v4101_v51  ;;  %v4165_v50 = vld [vmem:[#allocation4 + $0x6a8] ss:$16 sps:$4 sm:$0xff]   ;;  %v4170_v51 = vld [vmem:[#allocation4 + $0x6c4] ss:$16 sps:$4 sm:$0xff]  }
 0x1c0   :  { %2745 = vmatpush1.bf16.msra.mxu0 %v4096_v52  ;;  %2909 = vmatpush1.bf16.msra.mxu1 %v4099_v54  ;;  %v4173_v52 = vld [vmem:[#allocation4 + $0x6cc] ss:$16 sps:$4 sm:$0xff]   ;;  %v4168_v54 = vld [vmem:[#allocation4 + $0x6c0] ss:$16 sps:$4 sm:$0xff]  }
 0x1c1   :  { %2746 = vmatprep.subr.bf16.mxu0 %v4104_v55  ;;  %2910 = vmatprep.subr.bf16.mxu1 %v4107_v56  ;;  %v4171_v55 = vld [vmem:[#allocation4 + $0x6c8] ss:$16 sps:$4 sm:$0xff]   ;;  %v4176_v56 = vld [vmem:[#allocation4 + $0x6e4] ss:$16 sps:$4 sm:$0xff]  }
 0x1c4   :  { %2747 = vmatpush1.bf16.msra.mxu0 %v4102_v57  ;;  %2911 = vmatpush1.bf16.msra.mxu1 %v4105_v58  ;;  %v4179_v57 = vld [vmem:[#allocation4 + $0x6ec] ss:$16 sps:$4 sm:$0xff]   ;;  %v4174_v58 = vld [vmem:[#allocation4 + $0x6e0] ss:$16 sps:$4 sm:$0xff]  }
 0x1c5   :  { %2748 = vmatprep.subr.bf16.mxu0 %v4110_v47  ;;  %2912 = vmatprep.subr.bf16.mxu1 %v4113_v59  ;;  %v4177_v47 = vld [vmem:[#allocation4 + $0x6e8] ss:$16 sps:$4 sm:$0xff]   ;;  %v4182_v59 = vld [vmem:[#allocation4 + $0x704] ss:$16 sps:$4 sm:$0xff]  }
 0x1c8   :  { %2749 = vmatpush1.bf16.msra.mxu0 %v4108_v60  ;;  %2913 = vmatpush1.bf16.msra.mxu1 %v4111_v61  ;;  %v4180_v60 = vld [vmem:[#allocation4 + $0x700] ss:$16 sps:$4 sm:$0xff]   ;;  %v4183_v61 = vld [vmem:[#allocation4 + $0x708] ss:$16 sps:$4 sm:$0xff]  }
 0x1c9   :  { %2750 = vmatprep.subr.bf16.mxu0 %v4116_v62  ;;  %2914 = vmatprep.subr.bf16.mxu1 %v4119_v63  ;;  %v4188_v62 = vld [vmem:[#allocation4 + $0x724] ss:$16 sps:$4 sm:$0xff]   ;;  %v4191_v63 = vld [vmem:[#allocation4 + $0x72c] ss:$16 sps:$4 sm:$0xff]  }
 0x1cc   :  { %2751 = vmatpush1.bf16.msra.mxu0 %v4114_v2  ;;  %2915 = vmatpush1.bf16.msra.mxu1 %v4117_v3  ;;  %v4194_v2 = vld [vmem:[#allocation4 + $0x744] ss:$16 sps:$4 sm:$0xff]   ;;  %v4197_v3 = vld [vmem:[#allocation4 + $0x74c] ss:$16 sps:$4 sm:$0xff]  }
 0x1cd   :  { %2752 = vmatprep.subr.bf16.mxu0 %v4122_v4  ;;  %2916 = vmatprep.subr.bf16.mxu1 %v4125_v5  ;;  %v4192_v4 = vld [vmem:[#allocation4 + $0x740] ss:$16 sps:$4 sm:$0xff]   ;;  %v4195_v5 = vld [vmem:[#allocation4 + $0x748] ss:$16 sps:$4 sm:$0xff]  }
 0x1d0   :  { %2753 = vmatpush1.bf16.msra.mxu0 %v4120_v10  ;;  %2917 = vmatpush1.bf16.msra.mxu1 %v4123_v12  ;;  %v4198_v10 = vld [vmem:[#allocation4 + $0x760] ss:$16 sps:$4 sm:$0xff]   ;;  %v4201_v12 = vld [vmem:[#allocation4 + $0x768] ss:$16 sps:$4 sm:$0xff]  }
 0x1d1   :  { %2754 = vmatprep.subr.bf16.mxu0 %v4128_v13  ;;  %2918 = vmatprep.subr.bf16.mxu1 %v4131_v14  ;;  %v4206_v13 = vld [vmem:[#allocation4 + $0x784] ss:$16 sps:$4 sm:$0xff]   ;;  %v4209_v14 = vld [vmem:[#allocation4 + $0x78c] ss:$16 sps:$4 sm:$0xff]  }
 0x1d4   :  { %2755 = vmatpush1.bf16.msra.mxu0 %v4126_v18  ;;  %2919 = vmatpush1.bf16.msra.mxu1 %v4129_v19  ;;  %v225_v18 = vsub.s32 6, %v4420_v16  ;;  %v4212_v19 = vld [vmem:[#allocation4 + $0x7a4] ss:$16 sps:$4 sm:$0xff]  }
 0x1d5   :  { %2765 = vmatprep.subr.bf16.mxu0 %v4134_v20  ;;  %2929 = vmatprep.subr.bf16.mxu1 %v4137_v21  ;;  %v4215_v20 = vld [vmem:[#allocation4 + $0x7ac] ss:$16 sps:$4 sm:$0xff]   ;;  %v4210_v21 = vld [vmem:[#allocation4 + $0x7a0] ss:$16 sps:$4 sm:$0xff]  }
 0x1d7   :  { %2757 = vmatmul.mubr.bf16.vlgmr.msra.gmra.mrb[8].mxu0 %v1080_v24  ;;  %2921 = vmatmul.mubr.bf16.vlgmr.msra.gmra.mrb[8].mxu1 %v1080_v24  ;;  %v226_v24 = vrot.slane %v4451_v23, %v225_v18  ;;  %v4228_v23 = vld [vmem:[#allocation6 + $0x40] sm:$0xff]  }
 0x1d8   :  { %2766 = vmatpush1.bf16.msra.mxu0 %v4132_v26  ;;  %2930 = vmatpush1.bf16.msra.mxu1 %v4135_v27  ;;  %v4218_v26 = vld [vmem:[#allocation4 + $0x7c4] ss:$16 sps:$4 sm:$0xff]   ;;  %v4221_v27 = vld [vmem:[#allocation4 + $0x7cc] ss:$16 sps:$4 sm:$0xff]  }
 0x1d9   :  { %2767 = vmatprep.subr.bf16.mxu0 %v4140_v28  ;;  %2931 = vmatprep.subr.bf16.mxu1 %v4143_v29  ;;  %v4216_v28 = vld [vmem:[#allocation4 + $0x7c0] ss:$16 sps:$4 sm:$0xff]   ;;  %v4219_v29 = vld [vmem:[#allocation4 + $0x7c8] ss:$16 sps:$4 sm:$0xff]  }
 0x1da   :  { %2797 = vmatprep.mubr.bf16.mxu0 %v1083_v9  ;;  %2961 = vmatprep.mubr.bf16.mxu1 %v1083_v9  ;;  %v1062_v9 = vadd.f32 %v4475_v8, %v226_v24  ;;  %v4232_v8 = vld [vmem:[#allocation6 + $0x48] sm:$0xff]  }
 0x1dc   :  { %2768 = vmatpush1.bf16.msra.mxu0 %v4138_v30  ;;  %2932 = vmatpush1.bf16.msra.mxu1 %v4141_v31  ;;  %v4224_v30 = vld [vmem:[#allocation4 + $0x7e4] ss:$16 sps:$4 sm:$0xff]   ;;  %v4227_v31 = vld [vmem:[#allocation4 + $0x7ec] ss:$16 sps:$4 sm:$0xff]  }
 0x1dd   :  { %2769 = vmatprep.subr.bf16.mxu0 %v4146_v32  ;;  %2933 = vmatprep.subr.bf16.mxu1 %v4149_v33  ;;  %v4222_v32 = vld [vmem:[#allocation4 + $0x7e0] ss:$16 sps:$4 sm:$0xff]   ;;  %v4225_v33 = vld [vmem:[#allocation4 + $0x7e8] ss:$16 sps:$4 sm:$0xff]  }
 0x1e0   :  { %2770 = vmatpush1.bf16.msra.mxu0 %v4144_v36  ;;  %2934 = vmatpush1.bf16.msra.mxu1 %v4147_v37  ;;  %v1074_v36 = vmax.f32 %v1062_v9, 0.0  ;;  %v4229_v37 = vld [vmem:[#allocation6 + $0xc0] sm:$0xff]  }
 0x1e1   :  { %2771 = vmatprep.subr.bf16.mxu0 %v4152_v39  ;;  %2935 = vmatprep.subr.bf16.mxu1 %v4155_v40  ;;  %v4230_v39 = vld [vmem:[#allocation6] sm:$0xff]  }
 0x1e2   :  { %v4231_v40 = vld [vmem:[#allocation6 + $0x80] sm:$0xff]  }
 0x1e4   :  { %2772 = vmatpush1.bf16.msra.mxu0 %v4150_v41  ;;  %2936 = vmatpush1.bf16.msra.mxu1 %v4153_v11  ;;  %v1082_v41 = vpack.c.bf16 %v1074_v36, %v1074_v36  ;;  %v4233_v11 = vld [vmem:[#allocation6 + $0xc8] sm:$0xff]  }
 0x1e5   :  { %2773 = vmatprep.subr.bf16.mxu0 %v4158_v42  ;;  %2937 = vmatprep.subr.bf16.mxu1 %v4161_v43  ;;  %v4234_v42 = vld [vmem:[#allocation6 + $0x8] sm:$0xff]  }
 0x1e6   :  { %v4235_v43 = vld [vmem:[#allocation6 + $0x88] sm:$0xff]  }
 0x1e8   :  { %2774 = vmatpush1.bf16.msra.mxu0 %v4156_v44  ;;  %2938 = vmatpush1.bf16.msra.mxu1 %v4159_v45  ;;  %v4236_v44 = vld [vmem:[#allocation6 + $0x50] sm:$0xff]  }
 0x1e9   :  { %2775 = vmatprep.subr.bf16.mxu0 %v4164_v46  ;;  %2939 = vmatprep.subr.bf16.mxu1 %v4167_v48  ;;  %v4237_v45 = vld [vmem:[#allocation6 + $0xd0] sm:$0xff]  }
 0x1ea   :  { %v4238_v46 = vld [vmem:[#allocation6 + $0x10] sm:$0xff]  }
 0x1eb   :  { %v4239_v48 = vld [vmem:[#allocation6 + $0x90] sm:$0xff]  }
 0x1ec   :  { %2776 = vmatpush1.bf16.msra.mxu0 %v4162_v49  ;;  %2940 = vmatpush1.bf16.msra.mxu1 %v4165_v50  ;;  %v4240_v49 = vld [vmem:[#allocation6 + $0x58] sm:$0xff]  }
 0x1ed   :  { %2777 = vmatprep.subr.bf16.mxu0 %v4170_v51  ;;  %2941 = vmatprep.subr.bf16.mxu1 %v4173_v52  ;;  %v4241_v50 = vld [vmem:[#allocation6 + $0xd8] sm:$0xff]  }
 0x1ee   :  { %v4242_v51 = vld [vmem:[#allocation6 + $0x18] sm:$0xff]  }
 0x1ef   :  { %v4243_v52 = vld [vmem:[#allocation6 + $0x98] sm:$0xff]  }
 0x1f0   :  { %2778 = vmatpush1.bf16.msra.mxu0 %v4168_v54  ;;  %2942 = vmatpush1.bf16.msra.mxu1 %v4171_v55  ;;  %v4244_v54 = vld [vmem:[#allocation6 + $0x60] sm:$0xff]  }
 0x1f1   :  { %2779 = vmatprep.subr.bf16.mxu0 %v4176_v56  ;;  %2943 = vmatprep.subr.bf16.mxu1 %v4179_v57  ;;  %v4245_v55 = vld [vmem:[#allocation6 + $0xe0] sm:$0xff]  }
 0x1f2   :  { %v4246_v56 = vld [vmem:[#allocation6 + $0x20] sm:$0xff]  }
 0x1f3   :  { %v4247_v57 = vld [vmem:[#allocation6 + $0xa0] sm:$0xff]  }
 0x1f4   :  { %2780 = vmatpush1.bf16.msra.mxu0 %v4174_v58  ;;  %2944 = vmatpush1.bf16.msra.mxu1 %v4177_v47  ;;  %v4248_v58 = vld [vmem:[#allocation6 + $0x68] sm:$0xff]  }
 0x1f5   :  { %2781 = vmatprep.subr.bf16.mxu0 %v4182_v59  ;;  %2945 = vmatprep.subr.bf16.mxu1 %v4185_v38  ;;  %v4249_v47 = vld [vmem:[#allocation6 + $0xe8] sm:$0xff]  }
 0x1f6   :  { %v4250_v59 = vld [vmem:[#allocation6 + $0x28] sm:$0xff]  }
 0x1f7   :  { %v4251_v38 = vld [vmem:[#allocation6 + $0xa8] sm:$0xff]  }
 0x1f8   :  { %2782 = vmatpush1.bf16.msra.mxu0 %v4180_v60  ;;  %2946 = vmatpush1.bf16.msra.mxu1 %v4183_v61  ;;  %v4252_v60 = vld [vmem:[#allocation6 + $0x70] sm:$0xff]  }
 0x1f9   :  { %2783 = vmatprep.subr.bf16.mxu0 %v4188_v62  ;;  %2947 = vmatprep.subr.bf16.mxu1 %v4191_v63  ;;  %v4253_v61 = vld [vmem:[#allocation6 + $0xf0] sm:$0xff]  }
 0x1fa   :  { %v4254_v62 = vld [vmem:[#allocation6 + $0x30] sm:$0xff]  }
 0x1fb   :  { %v4255_v63 = vld [vmem:[#allocation6 + $0xb0] sm:$0xff]  }
 0x1fc   :  { %2784 = vmatpush1.bf16.msra.mxu0 %v4186_v0  ;;  %2948 = vmatpush1.bf16.msra.mxu1 %v4189_v1  ;;  %v4256_v0 = vld [vmem:[#allocation6 + $0x78] sm:$0xff]  }
 0x1fd   :  { %2785 = vmatprep.subr.bf16.mxu0 %v4194_v2  ;;  %2949 = vmatprep.subr.bf16.mxu1 %v4197_v3  ;;  %v4257_v1 = vld [vmem:[#allocation6 + $0xf8] sm:$0xff]  }
 0x1fe   :  { %v4258_v2 = vld [vmem:[#allocation6 + $0x38] sm:$0xff]  }
 0x1ff   :  { %v4259_v3 = vld [vmem:[#allocation6 + $0xb8] sm:$0xff]  }
 0x200   :  { %2786 = vmatpush1.bf16.msra.mxu0 %v4192_v4  ;;  %2950 = vmatpush1.bf16.msra.mxu1 %v4195_v5  ;;  %v1340_v4 = vld [vmem:[%s4509_s4] sm:$0xf] }
 0x201   :  { %2787 = vmatprep.subr.bf16.mxu0 %v4200_v6  ;;  %2951 = vmatprep.subr.bf16.mxu1 %v4203_v7  ;;  %v1345_v5 = vrot.slane %v1340_v4, %v201_v22  ;;  %v1353_v6 = vrot.slane %v1340_v4, %v209_v34  ;;  %v1349_v7 = vrot.slane %v1340_v4, %v205_v25 }
 0x204   :  { %2788 = vmatpush1.bf16.msra.mxu0 %v4198_v10  ;;  %2952 = vmatpush1.bf16.msra.mxu1 %v4201_v12  ;;  %v1357_v10 = vrot.slane %v1340_v4, %v213_v35 }
 0x205   :  { %2789 = vmatprep.subr.bf16.mxu0 %v4206_v13  ;;  %2953 = vmatprep.subr.bf16.mxu1 %v4209_v14 }
 0x208   :  { %2790 = vmatpush1.bf16.msra.mxu0 %v4204_v15  ;;  %2954 = vmatpush1.bf16.msra.mxu1 %v4207_v17 }
 0x209   :  { %2791 = vmatprep.subr.bf16.mxu0 %v4212_v19  ;;  %2955 = vmatprep.subr.bf16.mxu1 %v4215_v20 }
 0x20c   :  { %2792 = vmatpush1.bf16.msra.mxu0 %v4210_v21  ;;  %2956 = vmatpush1.bf16.msra.mxu1 %v4213_v53 }
 0x20d   :  { %2793 = vmatprep.subr.bf16.mxu0 %v4218_v26  ;;  %2957 = vmatprep.subr.bf16.mxu1 %v4221_v27 }
 0x210   :  { %2794 = vmatpush1.bf16.msra.mxu0 %v4216_v28  ;;  %2958 = vmatpush1.bf16.msra.mxu1 %v4219_v29 }
 0x211   :  { %2795 = vmatprep.subr.bf16.mxu0 %v4224_v30  ;;  %2959 = vmatprep.subr.bf16.mxu1 %v4227_v31  ;;  %v3729_v31 = vld [vmem:[%s4511_s6] ss:$0 sm:$0xff] }
 0x214   :  { %2796 = vmatpush1.bf16.msra.mxu0 %v4222_v32  ;;  %2960 = vmatpush1.bf16.msra.mxu1 %v4225_v33 }
 0x215   :  { %3762 = vmatprep.subr.bf16.mxu0 %v4228_v23  ;;  %3784 = vmatprep.subr.bf16.mxu1 %v4229_v37 }
 0x217   :  { %2798 = vmatmul.mubr.bf16.vlgmr.msra.gmra.mrb[8].mxu0 %v1082_v41  ;;  %2962 = vmatmul.mubr.bf16.vlgmr.msra.gmra.mrb[8].mxu1 %v1082_v41 }
 0x218   :  { %3763 = vmatpush3.bf16.msra.mxu0 %v4230_v39  ;;  %3785 = vmatpush3.bf16.msra.mxu1 %v4231_v40 }
 0x219   :  { %3764 = vmatprep.subr.bf16.mxu0 %v4232_v8  ;;  %3786 = vmatprep.subr.bf16.mxu1 %v4233_v11 }
 0x21c   :  { %3765 = vmatpush3.bf16.msra.mxu0 %v4234_v42  ;;  %3787 = vmatpush3.bf16.msra.mxu1 %v4235_v43 }
 0x21d   :  { %3766 = vmatprep.subr.bf16.mxu0 %v4236_v44  ;;  %3788 = vmatprep.subr.bf16.mxu1 %v4237_v45 }
 0x220   :  { %3767 = vmatpush3.bf16.msra.mxu0 %v4238_v46  ;;  %3789 = vmatpush3.bf16.msra.mxu1 %v4239_v48 }
 0x221   :  { %3768 = vmatprep.subr.bf16.mxu0 %v4240_v49  ;;  %3790 = vmatprep.subr.bf16.mxu1 %v4241_v50 }
 0x224   :  { %3769 = vmatpush3.bf16.msra.mxu0 %v4242_v51  ;;  %3791 = vmatpush3.bf16.msra.mxu1 %v4243_v52 }
 0x225   :  { %3770 = vmatprep.subr.bf16.mxu0 %v4244_v54  ;;  %3792 = vmatprep.subr.bf16.mxu1 %v4245_v55 }
 0x228   :  { %3771 = vmatpush3.bf16.msra.mxu0 %v4246_v56  ;;  %3793 = vmatpush3.bf16.msra.mxu1 %v4247_v57 }
 0x229   :  { %3772 = vmatprep.subr.bf16.mxu0 %v4248_v58  ;;  %3794 = vmatprep.subr.bf16.mxu1 %v4249_v47 }
 0x22c   :  { %3773 = vmatpush3.bf16.msra.mxu0 %v4250_v59  ;;  %3795 = vmatpush3.bf16.msra.mxu1 %v4251_v38 }
 0x22d   :  { %3774 = vmatprep.subr.bf16.mxu0 %v4252_v60  ;;  %3796 = vmatprep.subr.bf16.mxu1 %v4253_v61 }
 0x230   :  { %3775 = vmatpush3.bf16.msra.mxu0 %v4254_v62  ;;  %3797 = vmatpush3.bf16.msra.mxu1 %v4255_v63 }
 0x231   :  { %3776 = vmatprep.subr.bf16.mxu0 %v4256_v0  ;;  %3798 = vmatprep.subr.bf16.mxu1 %v4257_v1 }
 0x234   :  { %3777 = vmatpush3.bf16.msra.mxu0 %v4258_v2  ;;  %3799 = vmatpush3.bf16.msra.mxu1 %v4259_v3 }
 0x2ea   :  { %v2799_v12 = vpop.f32.mrb[8].mxu0  ;;  %v2963_v13 = vpop.f32.mrb[8].mxu1 }
 0x2eb   :  { %v3806_v14 = vadd.f32 %v2799_v12, %v1345_v5  ;;  %v3808_v15 = vadd.f32 %v2963_v13, %v1353_v6  ;;  %v2801_v17 = vpop.f32.mrb[9].mxu0  ;;  %v2965_v18 = vpop.f32.mrb[9].mxu1 }
 0x2ec   :  { %v3807_v19 = vadd.f32 %v2801_v17, %v1349_v7  ;;  %v3809_v20 = vadd.f32 %v2965_v18, %v1357_v10  ;;  %v2803_v21 = vpop.f32.mrb[10].mxu0  ;;  %v2967_v53 = vpop.f32.mrb[10].mxu1 }
 0x2ed   :  { %v2970_v22 = vmax.f32 %v3806_v14, 0.0  ;;  %v2972_v24 = vmax.f32 %v3808_v15, 0.0  ;;  %v2804_v26 = vpop.f32.mrb[11].mxu0  ;;  %v2968_v34 = vpop.f32.mrb[11].mxu1 }
 0x2ee   :  { %v2971_v27 = vmax.f32 %v3807_v19, 0.0  ;;  %v2973_v28 = vmax.f32 %v3809_v20, 0.0 }
 0x2ef   :  { %v2974_v16 = vpack.c.bf16 %v2970_v22, %v2970_v22  ;;  %v2976_v35 = vpack.c.bf16 %v2972_v24, %v2972_v24 }
 0x2f0   :  { %v2975_v25 = vpack.c.bf16 %v2971_v27, %v2971_v27  ;;  %v2977_v29 = vpack.c.bf16 %v2973_v28, %v2973_v28 }
 0x2f2   :  { %3273 = vmatprep.mubr.bf16.mxu0 %v2975_v25  ;;  %3313 = vmatprep.mubr.bf16.mxu1 %v2977_v29 }
 0x2f3   :  { %3274 = vmatmul.mubr.bf16.vlgmr.msra.gmra.mrb[12].mxu0 %v2974_v16  ;;  %3314 = vmatmul.mubr.bf16.vlgmr.msra.gmra.mrb[12].mxu1 %v2976_v35 }
 0x3c6   :  { %v3778_v9 = vpop.f32.mrb[12].mxu0  ;;  %v3800_v30 = vpop.f32.mrb[12].mxu1 }
 0x3c7   :  { %v3779_v32 = vpop.f32.mrb[13].mxu0  ;;  %v3801_v33 = vpop.f32.mrb[13].mxu1 }
 0x3c8   :  { %v3780_v36 = vadd.f32 %v3779_v32, %v3778_v9  ;;  %v3802_v23 = vadd.f32 %v3801_v33, %v3800_v30  ;;  %v3781_v37 = vpop.f32.mrb[14].mxu0  ;;  %v3803_v39 = vpop.f32.mrb[14].mxu1 }
 0x3c9   :  { %v3782_v40 = vpop.f32.mrb[15].mxu0  ;;  %v3804_v41 = vpop.f32.mrb[15].mxu1 }
 0x3ca   :  { %v3276_v8 = vadd.f32 %v3780_v36, %v3729_v31 }
 0x3cc   :  { %v3316_v11 = vadd.f32 %v3802_v23, %v3276_v8 }
 0x3ce   :  { %v3322_v42 = vand.u32 2147483647, %v3316_v11  ;;  %v3321_v55 = vmax.f32 %v3316_v11, 0.0 }
 0x3d0   :  { %v3323_v43 = vsub.f32 0.0, %v3322_v42 }
 0x3d2   :  { %v3324_v44 = vmul.f32 1.442695, %v3323_v43 }
 0x3d4   :  { %4260 = vpow2.f32 %v3324_v44 }
 0x3de   :  { %v4261_v45 = vpop.eup %4260 }
 0x3df   :  { %v3326_v46 = vadd.f32 1.0, %v4261_v45  ;;  %v3329_v48 = vmul.f32 -0.5, %v4261_v45  ;;  %v3332_v50 = vand.u32 2147483647, %v4261_v45 }
 0x3e1   :  { %4262 = vlog2.f32 %v3326_v46  ;;  %v3330_v49 = vadd.f32 1.0, %v3329_v48  ;;  %vm3333_vm0 = vcmp.lt.f32.partialorder %v3332_v50, 0.0004427343 }
 0x3e3   :  { %v3331_v54 = vmul.f32 %v4261_v45, %v3330_v49 }
 0x3eb   :  { %v4263_v51 = vpop.eup %4262 }
 0x3ec   :  { %v3328_v52 = vmul.f32 0.6931472, %v4263_v51 }
 0x3ee   :  { %v3334_v56 = vsel %vm3333_vm0, %v3331_v54, %v3328_v52 }
 0x3ef   :  { %v3335_v57 = vadd.f32 %v3334_v56, %v3321_v55 }
 0x3f1   :  { %v3336_v58 = vadd.f32 1.0, %v3335_v57 }
 0x3f3   :  { %3337 = vst [vmem:[%s4512_s7] sm:$0x3] %v3336_v58 }
 0x3f4   :  { %3342 = vsyncpa [#allocation3], 1 }
 0x3f5   :  { %3343 = vsyncpa [#allocation5], 1 }

</bundles_post_ra>
